<compile_context>
chip_gen: v7x
topology: tpu7x:2x2x1
jax: 0.10.0
libtpu: 0.0.40
codegen_flags: <defaults>
</compile_context>

<pallas_src>
import math
from functools import partial

import numpy as np

import jax
import jax.numpy as jnp
from jax import lax
from jax.experimental import pallas as pl
from jax.experimental.pallas import tpu as pltpu


# ----------------------------------------------------------------------------
# small helpers
# ----------------------------------------------------------------------------
def _rup(x, m):
    return ((x + m - 1) // m) * m


def _pick_tn(n_padded):
    if n_padded <= 128:
        return n_padded
    return 256 if n_padded % 256 == 0 else 128


def _pick_tk(k_padded):
    if k_padded <= 128:
        return k_padded
    for cand in (2048, 1024, 512, 256, 128):
        if k_padded % cand == 0:
            return cand
    return 128


def _apply_act(r, act):
    if act == "elu":
        return jnp.where(r > 0, r, jnp.expm1(r))
    if act == "relu":
        return jnp.maximum(r, 0.0)
    if act == "gelu":
        return jax.nn.gelu(r, approximate=True)
    return r


# ----------------------------------------------------------------------------
# packed weights: arrays are pytree children, true dims are STATIC aux data
# ----------------------------------------------------------------------------
@jax.tree_util.register_pytree_node_class
class PackedLinear:
    def __init__(self, w, b, k, n):
        self.w, self.b, self.k, self.n = w, b, k, n

    def tree_flatten(self):
        return (self.w, self.b), (self.k, self.n)

    @classmethod
    def tree_unflatten(cls, aux, children):
        return cls(children[0], children[1], aux[0], aux[1])


@jax.tree_util.register_pytree_node_class
class PackedConv3x3:
    def __init__(self, w, b, cin, cout):
        self.w, self.b, self.cin, self.cout = w, b, cin, cout

    def tree_flatten(self):
        return (self.w, self.b), (self.cin, self.cout)

    @classmethod
    def tree_unflatten(cls, aux, children):
        return cls(children[0], children[1], aux[0], aux[1])


def pack_linear(w, b):
    """w: (K, N) f32, b: (N,) f32 -> matmul-ready padded bf16 weights."""
    k, n = w.shape
    if k <= 128:
        kp = _rup(k, 8)
    elif k >= 4096:                       # huge-K quality heads: 2048-wide tiles
        kp = _rup(k, 2048)
    else:
        kp = _rup(k, 128)
    np_ = n if n <= 128 else _rup(n, 128)
    wp = jnp.pad(w.astype(jnp.float32),
                 ((0, kp - k), (0, np_ - n))).astype(jnp.bfloat16)
    bp = jnp.pad(b.astype(jnp.float32), (0, np_ - n)).reshape(1, np_)
    return PackedLinear(wp, bp, k, n)


def pack_conv3x3(w, b=None):
    """w: (3,3,Cin,Cout) f32 -> (9, Cinp, Coutp) bf16, bias (1, Coutp) f32."""
    kh, kw, cin, cout = w.shape
    assert (kh, kw) == (3, 3)
    if b is None:
        b = jnp.zeros((cout,), jnp.float32)
    cinp = max(_rup(cin, 8), 8)           # Cin=3 (RGB) layers padded to 8
    coutp = cout if cout <= 128 else _rup(cout, 128)
    wp = jnp.pad(w.astype(jnp.float32),
                 ((0, 0), (0, 0), (0, cinp - cin), (0, coutp - cout)))
    wp = wp.reshape(9, cinp, coutp).astype(jnp.bfloat16)
    bp = jnp.pad(b.astype(jnp.float32), (0, coutp - cout)).reshape(1, coutp)
    return PackedConv3x3(wp, bp, cin, cout)


# ----------------------------------------------------------------------------
# Pallas fused matmul kernel:  out = act(A @ W + b)   (bf16 MXU, f32 acc)
# ----------------------------------------------------------------------------
def _matmul_kernel(act, a_ref, b_ref, bias_ref, o_ref, acc_ref):
    @pl.when(pl.program_id(2) == 0)
    def _():
        acc_ref[...] = jnp.zeros_like(acc_ref)

    acc_ref[...] += jnp.dot(a_ref[...], b_ref[...],
                            preferred_element_type=jnp.float32)

    @pl.when(pl.program_id(2) == pl.num_programs(2) - 1)
    def _():
        r = _apply_act(acc_ref[...] + bias_ref[...], act)
        o_ref[...] = r.astype(o_ref.dtype)


def _weight_spec(tk, tn, deep_buffer):
    idx = lambda i, j, k: (k, j)
    if deep_buffer and hasattr(pl, "Buffered"):
        try:
            return pl.BlockSpec((tk, tn), idx, pipeline_mode=pl.Buffered(3))
        except TypeError:       # pipeline_mode not supported in this jax
            pass
    return pl.BlockSpec((tk, tn), idx)


def matmul_bias_act(a, p, act="none", out_dtype=jnp.bfloat16):
    """a: (M, K); p: PackedLinear (pre-padded bf16 W, f32 bias)."""
    M, K = a.shape
    assert K == p.k, (K, p.k)
    Kp, Np = p.w.shape
    N = p.n
    tk = _pick_tk(Kp)
    tn = _pick_tn(Np)
    tm = min(512, _rup(max(M, 16), 16))
    Mp = _rup(M, tm)

    a_p = a.astype(jnp.bfloat16)
    if Mp != M or Kp != K:
        a_p = jnp.pad(a_p, ((0, Mp - M), (0, Kp - K)))

    k_steps = Kp // tk
    # deep-buffer the streamed weight tiles for weight-streaming layers
    w_spec = _weight_spec(tk, tn, deep_buffer=(k_steps >= 8))

    out = pl.pallas_call(
        partial(_matmul_kernel, act),
        out_shape=jax.ShapeDtypeStruct((Mp, Np), out_dtype),
        grid_spec=pltpu.PrefetchScalarGridSpec(
            num_scalar_prefetch=0,
            grid=(Mp // tm, Np // tn, k_steps),
            in_specs=[
                pl.BlockSpec((tm, tk), lambda i, j, k: (i, k)),
                w_spec,
                pl.BlockSpec((1, tn), lambda i, j, k: (0, j)),
            ],
            out_specs=pl.BlockSpec((tm, tn), lambda i, j, k: (i, j)),
            scratch_shapes=[pltpu.VMEM((tm, tn), jnp.float32)],
        ),
        compiler_params=pltpu.CompilerParams(
            dimension_semantics=("parallel", "parallel", "arbitrary"),
            vmem_limit_bytes=32 * 1024 * 1024),
    )(a_p, p.w, p.b)
    if Mp != M or Np != N:
        out = out[:M, :N]
    return out


# ----------------------------------------------------------------------------
# Pallas fused 3x3 conv kernel (stride 1, pad 1) -- no im2col in HBM
# ----------------------------------------------------------------------------
def _conv3x3_kernel(M, Wp, act, x_ref, w_ref, b_ref, o_ref):
    # x_ref: (1, (H+3)*Wp, Cin) bf16  zero-padded image, spatial flattened
    # w_ref: (9, Cin, tn)       bf16  tap-major conv weights
    # b_ref: (1, tn)            f32
    # o_ref: (1, M, tn)         M = H*Wp outputs in padded-width coordinates
    acc = None
    for t in range(9):
        di, dj = divmod(t, 3)
        off = di * Wp + dj                              # static per-tap shift
        a = x_ref[0, off:off + M, :]                    # bf16 slice, no cast
        d = jnp.dot(a, w_ref[t], preferred_element_type=jnp.float32)
        acc = d if acc is None else acc + d
    r = _apply_act(acc + b_ref[...], act)
    o_ref[0, :, :] = r.astype(o_ref.dtype)


def conv3x3_p(x, p, act="none", out_dtype=jnp.bfloat16):
    """3x3 / stride 1 / pad 1 conv.  x: (B,H,W,Cin) -> (B,H,W,Cout)."""
    B, H, W, C = x.shape
    assert C == p.cin, (C, p.cin)
    cinp = p.w.shape[1]
    Wp = W + 2
    # pad: 1 top, 2 bottom, 1 left, 1 right (extra bottom row keeps every
    # shifted slice in-bounds of the flattened buffer); channels -> cinp.
    xb = x.astype(jnp.bfloat16)
    xpad = jnp.pad(xb, ((0, 0), (1, 2), (1, 1), (0, cinp - C)))
    xflat = xpad.reshape(B, (H + 3) * Wp, cinp)
    M = H * Wp
    coutp = p.w.shape[2]
    tn = _pick_tn(coutp)

    y = pl.pallas_call(
        partial(_conv3x3_kernel, M, Wp, act),
        out_shape=jax.ShapeDtypeStruct((B, M, coutp), out_dtype),
        grid_spec=pltpu.PrefetchScalarGridSpec(
            num_scalar_prefetch=0,
            grid=(B, coutp // tn),
            in_specs=[
                pl.BlockSpec((1, (H + 3) * Wp, cinp), lambda b, j: (b, 0, 0)),
                pl.BlockSpec((9, cinp, tn), lambda b, j: (0, 0, j)),
                pl.BlockSpec((1, tn), lambda b, j: (0, j)),
            ],
            out_specs=pl.BlockSpec((1, M, tn), lambda b, j: (b, 0, j)),
        ),
        compiler_params=pltpu.CompilerParams(
            dimension_semantics=("parallel", "parallel"),
            # v5e's scoped-VMEM default is only 16 MiB; raise it explicitly.
            vmem_limit_bytes=32 * 1024 * 1024),
    )(xflat, p.w, p.b)
    # drop the two garbage padded-width columns and the channel padding
    return y.reshape(B, H, Wp, coutp)[:, :, :W, :p.cout]


# ----------------------------------------------------------------------------
# thin wrappers / XLA glue
# ----------------------------------------------------------------------------
def conv1x1(x, p, act="none", out_dtype=jnp.bfloat16):
    B, H, W, C = x.shape
    y = matmul_bias_act(x.reshape(B * H * W, C), p, act=act, out_dtype=out_dtype)
    return y.reshape(B, H, W, -1)


def dwconv3x3(x, p):
    """Depthwise 3x3 conv (XLA glue; tiny relative cost)."""
    y = lax.conv_general_dilated(
        x.astype(jnp.bfloat16), p["w"], (1, 1), "SAME",
        dimension_numbers=("NHWC", "HWIO", "NHWC"),
        feature_group_count=x.shape[-1],
        preferred_element_type=jnp.float32)
    return y + p["b"]


def maxpool2(x):
    B, H, W, C = x.shape
    return x.reshape(B, H // 2, 2, W // 2, 2, C).max(axis=(2, 4))


def pixel_unshuffle(x, r=2):
    B, H, W, C = x.shape
    x = x.reshape(B, H // r, r, W // r, r, C)
    x = x.transpose(0, 1, 3, 5, 2, 4)
    return x.reshape(B, H // r, W // r, C * r * r)


# ----------------------------------------------------------------------------
# SPP layer (adaptive pyramid pooling, 4 stats per bin) -- vectorized
# ----------------------------------------------------------------------------
def sum_multiply(n):
    return sum(i * i for i in range(1, n + 1))


def _bin_matrix(n, L):
    """PyTorch adaptive-pool style (possibly overlapping) bin assignment."""
    m = np.zeros((L, n), np.float32)
    for i in range(L):
        a = (i * n) // L
        b = -((-(i + 1) * n) // L)
        m[i, a:b] = 1.0
    return m


def _adaptive_stats(x, L):
    """mean / max / min / std on an LxL adaptive grid -> (B, L*L*C*4) f32."""
    # TODO(synk): population std in f32; the reference SPPLayer may use
    #             torch.std's unbiased estimator -- not verifiable here.
    x = x.astype(jnp.float32)
    B, H, W, C = x.shape
    Rr = jnp.asarray(_bin_matrix(H, L))        # (L, H)
    Rc = jnp.asarray(_bin_matrix(W, L))        # (L, W)

    S = jnp.einsum("jw,biwc->bijc", Rc, jnp.einsum("ih,bhwc->biwc", Rr, x))
    Q = jnp.einsum("jw,biwc->bijc", Rc, jnp.einsum("ih,bhwc->biwc", Rr, x * x))
    counts = (Rr.sum(1)[:, None] * Rc.sum(1)[None, :])[None, :, :, None]
    mean = S / counts
    var = jnp.maximum(Q / counts - mean * mean, 0.0)
    std = jnp.sqrt(var)

    rmask = Rr[None, :, :, None, None] > 0      # (1,L,H,1,1)
    xm = x[:, None]                             # (B,1,H,W,C)
    rmax = jnp.max(jnp.where(rmask, xm, -jnp.inf), axis=2)      # (B,L,W,C)
    rmin = jnp.min(jnp.where(rmask, xm, jnp.inf), axis=2)
    cmask = Rc[None, None, :, :, None] > 0      # (1,1,L,W,1)
    mx = jnp.max(jnp.where(cmask, rmax[:, :, None], -jnp.inf), axis=3)
    mn = jnp.min(jnp.where(cmask, rmin[:, :, None], jnp.inf), axis=3)

    feats = jnp.stack([mean, mx, mn, std], axis=-1)   # (B,L,L,C,4)
    return feats.reshape(B, -1)


def spp(x, num_levels):
    return jnp.concatenate([_adaptive_stats(x, l)
                            for l in range(1, num_levels + 1)], axis=1)


# ----------------------------------------------------------------------------
# Restormer-style transformer block
# ----------------------------------------------------------------------------
def layernorm_withbias(x, w, b, eps=1e-5):
    x = x.astype(jnp.float32)
    mu = x.mean(-1, keepdims=True)
    var = x.var(-1, keepdims=True)
    return (x - mu) / jnp.sqrt(var + eps) * w + b


def mdta_attention(x, p, num_heads):
    B, H, W, C = x.shape
    qkv = conv1x1(x, p["qkv"])
    qkv = dwconv3x3(qkv, p["qkv_dw"])
    q, k, v = jnp.split(qkv, 3, axis=-1)
    d = C // num_heads

    def to_heads(t):
        return t.reshape(B, H * W, num_heads, d).transpose(0, 2, 3, 1)

    q, k, v = to_heads(q), to_heads(k), to_heads(v)
    q = q / jnp.maximum(jnp.linalg.norm(q, axis=-1, keepdims=True), 1e-12)
    k = k / jnp.maximum(jnp.linalg.norm(k, axis=-1, keepdims=True), 1e-12)
    attn = jnp.einsum("bhdn,bhen->bhde", q, k) * p["temperature"]
    attn = jax.nn.softmax(attn, axis=-1)
    out = jnp.einsum("bhde,bhen->bhdn", attn, v)
    out = out.transpose(0, 3, 1, 2).reshape(B, H, W, C)
    return conv1x1(out, p["proj"])


def gdfn_ffn(x, p):
    # TODO(synk): gate + out-projection could be fused into one pallas_call to
    #             save one HBM round trip per block.
    y = conv1x1(x, p["in"])
    y = dwconv3x3(y, p["dw"])
    x1, x2 = jnp.split(y, 2, axis=-1)
    y = jax.nn.gelu(x1, approximate=False) * x2      # exact erf, matches nn.GELU
    return conv1x1(y, p["out"])


def transformer_block(x, p, num_heads):
    x = x + mdta_attention(layernorm_withbias(x, p["n1w"], p["n1b"]),
                           p["attn"], num_heads)
    x = x + gdfn_ffn(layernorm_withbias(x, p["n2w"], p["n2b"]), p["ffn"])
    return x


def encoder(x, blocks, num_heads):
    for bp in blocks:
        x = transformer_block(x, bp, num_heads)
    return x


def downsample(x, p):
    # Conv2d(n_feat, n_feat//4, 3, pad=1, bias=False) + PixelUnshuffle(2)
    y = conv3x3_p(x, p, act="none")
    return pixel_unshuffle(y, 2)


# ----------------------------------------------------------------------------
# Parameter construction (deterministic synthetic weights)
# ----------------------------------------------------------------------------
DIM = [16, 32, 64, 128, 256, 512]
NUM_BLOCKS = [1, 1, 2, 2, 3, 3]
HEADS = [8, 8, 8, 8, 8, 8]
RATIO = [1, 1, 1, 1, 1, 1]

FEAT_NL_DIM = (16 * sum_multiply(8) + 32 * sum_multiply(4) + 64 * sum_multiply(4)
               + 128 * sum_multiply(2) + 256 * sum_multiply(2)
               + 512 * sum_multiply(1)) * 4
FEAT_L_DIM = (16 * sum_multiply(8) + 32 * sum_multiply(4) + 64 * sum_multiply(4)
              + 128 * sum_multiply(2) + 256 * sum_multiply(1)) * 4


def init_params(seed=0):
    key = jax.random.PRNGKey(seed)
    cnt = [0]

    def nk():
        cnt[0] += 1
        return jax.random.fold_in(key, cnt[0])

    def conv3(cin, cout):
        w = jax.random.normal(nk(), (3, 3, cin, cout), jnp.float32) \
            / math.sqrt(9 * cin)
        return pack_conv3x3(w, jnp.zeros((cout,), jnp.float32))

    def lin(cin, cout):
        w = jax.random.normal(nk(), (cin, cout), jnp.float32) / math.sqrt(cin)
        return pack_linear(w, jnp.zeros((cout,), jnp.float32))

    def dw(ch):
        w = jax.random.normal(nk(), (3, 3, 1, ch), jnp.float32) / 3.0
        return {"w": w.astype(jnp.bfloat16), "b": jnp.zeros((ch,), jnp.float32)}

    vgg_cfg = {
        "s1": [(3, 64), (64, 64)],
        "s2": [(64, 128), (128, 128)],
        "s3": [(128, 256), (256, 256), (256, 256), (256, 256)],
        "s4": [(256, 512), (512, 512), (512, 512), (512, 512)],
        "s5": [(512, 512)] * 4,
    }
    vgg = {name: [conv3(ci, co) for ci, co in lst]
           for name, lst in vgg_cfg.items()}

    refine = []
    for ci, cm, co in zip([64, 128, 256, 512, 512],
                          [32, 64, 128, 256, 512],
                          [16, 32, 64, 128, 256]):
        refine.append({"c0": lin(ci, cm), "c1": conv3(cm, cm), "c2": lin(cm, co)})

    def tblock(dim, heads, ratio):
        hidden = int(dim * ratio)
        return {
            "n1w": jnp.ones((dim,), jnp.float32),
            "n1b": jnp.zeros((dim,), jnp.float32),
            "n2w": jnp.ones((dim,), jnp.float32),
            "n2b": jnp.zeros((dim,), jnp.float32),
            "attn": {
                "temperature": jnp.ones((heads, 1, 1), jnp.float32),
                "qkv": lin(dim, dim * 3),
                "qkv_dw": dw(dim * 3),
                "proj": lin(dim, dim),
            },
            "ffn": {
                "in": lin(dim, hidden * 2),
                "dw": dw(hidden * 2),
                "out": lin(hidden, dim),
            },
        }

    encoders = [[tblock(DIM[i], HEADS[i], RATIO[i])
                 for _ in range(NUM_BLOCKS[i])] for i in range(6)]

    downs = [conv3(d, d // 4) for d in [16, 32, 64, 128, 256]]
    patch_embed = conv3(3, 16)

    q = {
        "q1": lin(FEAT_NL_DIM, 128), "q2": lin(128, 64), "q3": lin(64, 1),
        "q4": lin(FEAT_L_DIM, 128), "q5": lin(128, 64), "q6": lin(64, 1),
        "q7": lin(FEAT_NL_DIM + FEAT_L_DIM, 128), "q8": lin(128, 64),
        "q9": lin(64, 1),
    }

    return {"vgg": vgg, "refine": refine, "enc": encoders, "down": downs,
            "pe": patch_embed, "q": q}


# ----------------------------------------------------------------------------
# Forward pass
# ----------------------------------------------------------------------------
def quality_head(x, p1, p2, p3):
    x = matmul_bias_act(x, p1, act="elu", out_dtype=jnp.float32)
    x = matmul_bias_act(x, p2, act="elu", out_dtype=jnp.float32)
    return matmul_bias_act(x, p3, act="none", out_dtype=jnp.float32)


def network_forward(params, patch_nchw):
    x = jnp.transpose(patch_nchw, (0, 2, 3, 1)).astype(jnp.float32)  # -> NHWC

    def run_stage(h, convs):
        for c in convs:
            h = conv3x3_p(h, c, act="relu")
        return maxpool2(h)

    lf = []
    h = x
    for name in ["s1", "s2", "s3", "s4", "s5"]:
        h = run_stage(h, params["vgg"][name])
        lf.append(h)

    def refine(h, p):
        h = conv1x1(h, p["c0"], act="elu")
        h = conv3x3_p(h, p["c1"], act="elu")
        h = conv1x1(h, p["c2"], act="elu")
        return h

    lf = [refine(f, p) for f, p in zip(lf, params["refine"])]
    spp_levels_l = [8, 4, 4, 2, 1]
    lq = [spp(f, l) for f, l in zip(lf, spp_levels_l)]
    feat_l = jnp.concatenate(lq, axis=1)

    # Non-local (transformer) branch
    emb = conv3x3_p(x, params["pe"], act="none")
    nspp_levels = [8, 4, 4, 2, 2, 1]

    nf = encoder(emb, params["enc"][0], HEADS[0])
    nlq = [spp(nf, nspp_levels[0])]
    for i in range(5):
        nd = downsample(nf, params["down"][i])
        cat = jnp.concatenate([lf[i], nd], axis=-1)   # channels: [local, down]
        nf = encoder(cat, params["enc"][i + 1], HEADS[i + 1])
        nlq.append(spp(nf, nspp_levels[i + 1]))
    feat_nl = jnp.concatenate(nlq, axis=1)

    overall = jnp.concatenate([feat_nl, feat_l], axis=1)

    q = params["q"]
    quality_nl_out = quality_head(feat_nl, q["q1"], q["q2"], q["q3"])
    quality_l_out = quality_head(feat_l, q["q4"], q["q5"], q["q6"])
    quality_fusion_out = quality_head(overall, q["q7"], q["q8"], q["q9"])
    return quality_fusion_out, quality_nl_out, quality_l_out


# ----------------------------------------------------------------------------
if __name__ == "__main__":
    # --- tolerance-checked micro-tests of the two Pallas kernels -------------
    def _rel_err(a, b):
        a = jnp.asarray(a, jnp.float32)
        b = jnp.asarray(b, jnp.float32)
        return float(jnp.linalg.norm(a - b) / (jnp.linalg.norm(b) + 1e-6))

    kx = jax.random.normal(jax.random.PRNGKey(1), (2, 8, 8, 32), jnp.float32)
    kw = jax.random.normal(jax.random.PRNGKey(2), (3, 3, 32, 64),
                           jnp.float32) / math.sqrt(9 * 32)
    kb = 0.1 * jax.random.normal(jax.random.PRNGKey(3), (64,), jnp.float32)
    conv_ref = lax.conv_general_dilated(
        kx, kw, (1, 1), "SAME",
        dimension_numbers=("NHWC", "HWIO", "NHWC")) + kb
    conv_got = conv3x3_p(kx, pack_conv3x3(kw, kb), act="none",
                         out_dtype=jnp.float32)
    assert _rel_err(conv_got, conv_ref) < 3e-2, "conv3x3 kernel mismatch"

    ma = jax.random.normal(jax.random.PRNGKey(4), (37, 300), jnp.float32)
    mw = jax.random.normal(jax.random.PRNGKey(5), (300, 200),
                           jnp.float32) / math.sqrt(300)
    mb = 0.1 * jax.random.normal(jax.random.PRNGKey(6), (200,), jnp.float32)
    mm_ref = ma @ mw + mb
    mm_got = matmul_bias_act(ma, pack_linear(mw, mb), act="none",
                             out_dtype=jnp.float32)
    assert _rel_err(mm_got, mm_ref) < 3e-2, "matmul kernel mismatch"

    # --- full forward pass ----------------------------------------------------
    params = init_params(seed=0)
    # NCHW RGB patch (H, W multiples of 32 so every stage/pool is well defined)
    patch = jax.random.normal(jax.random.PRNGKey(0), (2, 3, 32, 32), jnp.float32)

    fwd = jax.jit(network_forward)
    q_fusion, q_nl, q_l = fwd(params, patch)
    jax.block_until_ready((q_fusion, q_nl, q_l))

    assert q_fusion.shape == (2, 1) and q_nl.shape == (2, 1) and q_l.shape == (2, 1)
    assert all(bool(jnp.all(jnp.isfinite(t))) for t in (q_fusion, q_nl, q_l))
    print("KERNEL_OK")
</pallas_src>

<mosaic_0001>
module attributes {stable_mosaic.version = 11 : i64} {
  func.func @_conv3x3_kernel(%arg0: i32, %arg1: i32, %arg2: memref<1x110x32xbf16, #tpu.memory_space<vmem>>, %arg3: memref<9x32x64xbf16, #tpu.memory_space<vmem>>, %arg4: memref<1x64xf32, #tpu.memory_space<vmem>>, %arg5: memref<1x80x64xf32, #tpu.memory_space<vmem>>) attributes {dimension_semantics = [#tpu.dimension_semantics<parallel>, #tpu.dimension_semantics<parallel>], iteration_bounds = array<i64: 2, 1>, scalar_prefetch = 0 : i64, scratch_operands = 0 : i64, tpu.core_type = #tpu.core_type<tc>, window_params = [{transform_indices = @transform_0, window_bounds = array<i64: 1, 110, 32>}, {transform_indices = @transform_1, window_bounds = array<i64: 9, 32, 64>}, {transform_indices = @transform_2, window_bounds = array<i64: 1, 64>}, {transform_indices = @transform_3, window_bounds = array<i64: 1, 80, 64>}]} {
    %c0 = arith.constant 0 : index
    %c0_0 = arith.constant 0 : index
    %c0_1 = arith.constant 0 : index
    %0 = vector.load %arg2[%c0, %c0_0, %c0_1] : memref<1x110x32xbf16, #tpu.memory_space<vmem>>, vector<1x80x32xbf16>
    %1 = vector.shape_cast %0 : vector<1x80x32xbf16> to vector<80x32xbf16>
    %c0_2 = arith.constant 0 : index
    %c0_3 = arith.constant 0 : index
    %c0_4 = arith.constant 0 : index
    %2 = vector.load %arg3[%c0_2, %c0_3, %c0_4] : memref<9x32x64xbf16, #tpu.memory_space<vmem>>, vector<1x32x64xbf16>
    %3 = vector.shape_cast %2 : vector<1x32x64xbf16> to vector<32x64xbf16>
    %cst = arith.constant dense<0.000000e+00> : vector<80x64xf32>
    %4 = tpu.matmul %1, %3, %cst {dimension_numbers = #tpu.dot_dimension_numbers<[1], [0], [0], [1], [0, 0, 1, 1], [], []>} : vector<80x32xbf16>, vector<32x64xbf16>, vector<80x64xf32> -> vector<80x64xf32>
    %c0_5 = arith.constant 0 : index
    %c1 = arith.constant 1 : index
    %c0_6 = arith.constant 0 : index
    %5 = vector.load %arg2[%c0_5, %c1, %c0_6] : memref<1x110x32xbf16, #tpu.memory_space<vmem>>, vector<1x80x32xbf16>
    %6 = vector.shape_cast %5 : vector<1x80x32xbf16> to vector<80x32xbf16>
    %c1_7 = arith.constant 1 : index
    %c0_8 = arith.constant 0 : index
    %c0_9 = arith.constant 0 : index
    %7 = vector.load %arg3[%c1_7, %c0_8, %c0_9] : memref<9x32x64xbf16, #tpu.memory_space<vmem>>, vector<1x32x64xbf16>
    %8 = vector.shape_cast %7 : vector<1x32x64xbf16> to vector<32x64xbf16>
    %cst_10 = arith.constant dense<0.000000e+00> : vector<80x64xf32>
    %9 = tpu.matmul %6, %8, %cst_10 {dimension_numbers = #tpu.dot_dimension_numbers<[1], [0], [0], [1], [0, 0, 1, 1], [], []>} : vector<80x32xbf16>, vector<32x64xbf16>, vector<80x64xf32> -> vector<80x64xf32>
    %10 = arith.addf %4, %9 : vector<80x64xf32>
    %c0_11 = arith.constant 0 : index
    %c2 = arith.constant 2 : index
    %c0_12 = arith.constant 0 : index
    %11 = vector.load %arg2[%c0_11, %c2, %c0_12] : memref<1x110x32xbf16, #tpu.memory_space<vmem>>, vector<1x80x32xbf16>
    %12 = vector.shape_cast %11 : vector<1x80x32xbf16> to vector<80x32xbf16>
    %c2_13 = arith.constant 2 : index
    %c0_14 = arith.constant 0 : index
    %c0_15 = arith.constant 0 : index
    %13 = vector.load %arg3[%c2_13, %c0_14, %c0_15] : memref<9x32x64xbf16, #tpu.memory_space<vmem>>, vector<1x32x64xbf16>
    %14 = vector.shape_cast %13 : vector<1x32x64xbf16> to vector<32x64xbf16>
    %cst_16 = arith.constant dense<0.000000e+00> : vector<80x64xf32>
    %15 = tpu.matmul %12, %14, %cst_16 {dimension_numbers = #tpu.dot_dimension_numbers<[1], [0], [0], [1], [0, 0, 1, 1], [], []>} : vector<80x32xbf16>, vector<32x64xbf16>, vector<80x64xf32> -> vector<80x64xf32>
    %16 = arith.addf %10, %15 : vector<80x64xf32>
    %c0_17 = arith.constant 0 : index
    %c10 = arith.constant 10 : index
    %c0_18 = arith.constant 0 : index
    %17 = vector.load %arg2[%c0_17, %c10, %c0_18] : memref<1x110x32xbf16, #tpu.memory_space<vmem>>, vector<1x80x32xbf16>
    %18 = vector.shape_cast %17 : vector<1x80x32xbf16> to vector<80x32xbf16>
    %c3 = arith.constant 3 : index
    %c0_19 = arith.constant 0 : index
    %c0_20 = arith.constant 0 : index
    %19 = vector.load %arg3[%c3, %c0_19, %c0_20] : memref<9x32x64xbf16, #tpu.memory_space<vmem>>, vector<1x32x64xbf16>
    %20 = vector.shape_cast %19 : vector<1x32x64xbf16> to vector<32x64xbf16>
    %cst_21 = arith.constant dense<0.000000e+00> : vector<80x64xf32>
    %21 = tpu.matmul %18, %20, %cst_21 {dimension_numbers = #tpu.dot_dimension_numbers<[1], [0], [0], [1], [0, 0, 1, 1], [], []>} : vector<80x32xbf16>, vector<32x64xbf16>, vector<80x64xf32> -> vector<80x64xf32>
    %22 = arith.addf %16, %21 : vector<80x64xf32>
    %c0_22 = arith.constant 0 : index
    %c11 = arith.constant 11 : index
    %c0_23 = arith.constant 0 : index
    %23 = vector.load %arg2[%c0_22, %c11, %c0_23] : memref<1x110x32xbf16, #tpu.memory_space<vmem>>, vector<1x80x32xbf16>
    %24 = vector.shape_cast %23 : vector<1x80x32xbf16> to vector<80x32xbf16>
    %c4 = arith.constant 4 : index
    %c0_24 = arith.constant 0 : index
    %c0_25 = arith.constant 0 : index
    %25 = vector.load %arg3[%c4, %c0_24, %c0_25] : memref<9x32x64xbf16, #tpu.memory_space<vmem>>, vector<1x32x64xbf16>
    %26 = vector.shape_cast %25 : vector<1x32x64xbf16> to vector<32x64xbf16>
    %cst_26 = arith.constant dense<0.000000e+00> : vector<80x64xf32>
    %27 = tpu.matmul %24, %26, %cst_26 {dimension_numbers = #tpu.dot_dimension_numbers<[1], [0], [0], [1], [0, 0, 1, 1], [], []>} : vector<80x32xbf16>, vector<32x64xbf16>, vector<80x64xf32> -> vector<80x64xf32>
    %28 = arith.addf %22, %27 : vector<80x64xf32>
    %c0_27 = arith.constant 0 : index
    %c12 = arith.constant 12 : index
    %c0_28 = arith.constant 0 : index
    %29 = vector.load %arg2[%c0_27, %c12, %c0_28] : memref<1x110x32xbf16, #tpu.memory_space<vmem>>, vector<1x80x32xbf16>
    %30 = vector.shape_cast %29 : vector<1x80x32xbf16> to vector<80x32xbf16>
    %c5 = arith.constant 5 : index
    %c0_29 = arith.constant 0 : index
    %c0_30 = arith.constant 0 : index
    %31 = vector.load %arg3[%c5, %c0_29, %c0_30] : memref<9x32x64xbf16, #tpu.memory_space<vmem>>, vector<1x32x64xbf16>
    %32 = vector.shape_cast %31 : vector<1x32x64xbf16> to vector<32x64xbf16>
    %cst_31 = arith.constant dense<0.000000e+00> : vector<80x64xf32>
    %33 = tpu.matmul %30, %32, %cst_31 {dimension_numbers = #tpu.dot_dimension_numbers<[1], [0], [0], [1], [0, 0, 1, 1], [], []>} : vector<80x32xbf16>, vector<32x64xbf16>, vector<80x64xf32> -> vector<80x64xf32>
    %34 = arith.addf %28, %33 : vector<80x64xf32>
    %c0_32 = arith.constant 0 : index
    %c20 = arith.constant 20 : index
    %c0_33 = arith.constant 0 : index
    %35 = vector.load %arg2[%c0_32, %c20, %c0_33] : memref<1x110x32xbf16, #tpu.memory_space<vmem>>, vector<1x80x32xbf16>
    %36 = vector.shape_cast %35 : vector<1x80x32xbf16> to vector<80x32xbf16>
    %c6 = arith.constant 6 : index
    %c0_34 = arith.constant 0 : index
    %c0_35 = arith.constant 0 : index
    %37 = vector.load %arg3[%c6, %c0_34, %c0_35] : memref<9x32x64xbf16, #tpu.memory_space<vmem>>, vector<1x32x64xbf16>
    %38 = vector.shape_cast %37 : vector<1x32x64xbf16> to vector<32x64xbf16>
    %cst_36 = arith.constant dense<0.000000e+00> : vector<80x64xf32>
    %39 = tpu.matmul %36, %38, %cst_36 {dimension_numbers = #tpu.dot_dimension_numbers<[1], [0], [0], [1], [0, 0, 1, 1], [], []>} : vector<80x32xbf16>, vector<32x64xbf16>, vector<80x64xf32> -> vector<80x64xf32>
    %40 = arith.addf %34, %39 : vector<80x64xf32>
    %c0_37 = arith.constant 0 : index
    %c21 = arith.constant 21 : index
    %c0_38 = arith.constant 0 : index
    %41 = vector.load %arg2[%c0_37, %c21, %c0_38] : memref<1x110x32xbf16, #tpu.memory_space<vmem>>, vector<1x80x32xbf16>
    %42 = vector.shape_cast %41 : vector<1x80x32xbf16> to vector<80x32xbf16>
    %c7 = arith.constant 7 : index
    %c0_39 = arith.constant 0 : index
    %c0_40 = arith.constant 0 : index
    %43 = vector.load %arg3[%c7, %c0_39, %c0_40] : memref<9x32x64xbf16, #tpu.memory_space<vmem>>, vector<1x32x64xbf16>
    %44 = vector.shape_cast %43 : vector<1x32x64xbf16> to vector<32x64xbf16>
    %cst_41 = arith.constant dense<0.000000e+00> : vector<80x64xf32>
    %45 = tpu.matmul %42, %44, %cst_41 {dimension_numbers = #tpu.dot_dimension_numbers<[1], [0], [0], [1], [0, 0, 1, 1], [], []>} : vector<80x32xbf16>, vector<32x64xbf16>, vector<80x64xf32> -> vector<80x64xf32>
    %46 = arith.addf %40, %45 : vector<80x64xf32>
    %c0_42 = arith.constant 0 : index
    %c22 = arith.constant 22 : index
    %c0_43 = arith.constant 0 : index
    %47 = vector.load %arg2[%c0_42, %c22, %c0_43] : memref<1x110x32xbf16, #tpu.memory_space<vmem>>, vector<1x80x32xbf16>
    %48 = vector.shape_cast %47 : vector<1x80x32xbf16> to vector<80x32xbf16>
    %c8 = arith.constant 8 : index
    %c0_44 = arith.constant 0 : index
    %c0_45 = arith.constant 0 : index
    %49 = vector.load %arg3[%c8, %c0_44, %c0_45] : memref<9x32x64xbf16, #tpu.memory_space<vmem>>, vector<1x32x64xbf16>
    %50 = vector.shape_cast %49 : vector<1x32x64xbf16> to vector<32x64xbf16>
    %cst_46 = arith.constant dense<0.000000e+00> : vector<80x64xf32>
    %51 = tpu.matmul %48, %50, %cst_46 {dimension_numbers = #tpu.dot_dimension_numbers<[1], [0], [0], [1], [0, 0, 1, 1], [], []>} : vector<80x32xbf16>, vector<32x64xbf16>, vector<80x64xf32> -> vector<80x64xf32>
    %52 = arith.addf %46, %51 : vector<80x64xf32>
    %c0_47 = arith.constant 0 : index
    %c0_48 = arith.constant 0 : index
    %53 = vector.load %arg4[%c0_47, %c0_48] : memref<1x64xf32, #tpu.memory_space<vmem>>, vector<1x64xf32>
    %54 = vector.broadcast %53 : vector<1x64xf32> to vector<80x64xf32>
    %55 = arith.addf %52, %54 : vector<80x64xf32>
    %c0_49 = arith.constant 0 : index
    %c0_50 = arith.constant 0 : index
    %c0_51 = arith.constant 0 : index
    %56 = vector.load %arg5[%c0_49, %c0_50, %c0_51] : memref<1x80x64xf32, #tpu.memory_space<vmem>>, vector<1x80x64xf32>
    %57 = vector.shape_cast %56 : vector<1x80x64xf32> to vector<80x64xf32>
    %58 = vector.shape_cast %55 : vector<80x64xf32> to vector<1x80x64xf32>
    tpu.vector_store %arg5[%c0_49, %c0_50, %c0_51], %58 {strides = array<i32>} : memref<1x80x64xf32, #tpu.memory_space<vmem>>, vector<1x80x64xf32>,
    return
  }
  func.func @transform_0(%arg0: i32, %arg1: i32) -> (i32, i32, i32) {
    %c0_i32 = arith.constant 0 : i32
    %c0_i32_0 = arith.constant 0 : i32
    %c0_i32_1 = arith.constant 0 : i32
    return %arg0, %c0_i32, %c0_i32_0 : i32, i32, i32
  }
  func.func @transform_1(%arg0: i32, %arg1: i32) -> (i32, i32, i32) {
    %c0_i32 = arith.constant 0 : i32
    %c0_i32_0 = arith.constant 0 : i32
    %c0_i32_1 = arith.constant 0 : i32
    return %c0_i32, %c0_i32_0, %arg1 : i32, i32, i32
  }
  func.func @transform_2(%arg0: i32, %arg1: i32) -> (i32, i32) {
    %c0_i32 = arith.constant 0 : i32
    %c0_i32_0 = arith.constant 0 : i32
    return %c0_i32, %arg1 : i32, i32
  }
  func.func @transform_3(%arg0: i32, %arg1: i32) -> (i32, i32, i32) {
    %c0_i32 = arith.constant 0 : i32
    %c0_i32_0 = arith.constant 0 : i32
    return %arg0, %c0_i32, %arg1 : i32, i32, i32
  }
}

</mosaic_0001>

<bundles_post_ra>
// kernel: tpu_custom_call.1
= control target key start
LH: loop header
LB: loop body
LE: loop exit
PB: predicated region body
PF: predicated region fallthrough
CT: control target
= control target key end

     0   :  { %s2242_s12 = smov 0   ;;  %s2244_s13 = smov 0   ;;  %s2710_s0 = inlined_call_operand.vmem [shape: bf16[2,110,32], index: 0, kind: input, shape index: {}]   ;;  %s2711_s1 = inlined_call_operand.vmem [shape: bf16[9,32,64], index: 1, kind: input, shape index: {}]   ;;  %s2712_s2 = inlined_call_operand.vmem [shape: f32[1,64], index: 2, kind: input, shape index: {}]   ;;  %s2713_s3 = inlined_call_operand.vmem [shape: f32[2,80,64], index: 3, kind: output, shape index: {}]  }
   0x1   :  { %s2246_s14 = smov 0  }
   0x2 LB: > { %s25_s15 = sadd.s32 1, %s2214_s13  ;;  %p1720_p0 = scmp.ge.s32.totalorder %s2218_s14, 1  ;;  %s2218_s14 = sphi %s2246_s14, %s13_s14   ;;  %s2214_s13 = sphi %s2244_s13, %s2715_s13   ;;  %s2210_s12 = sphi %s2242_s12, %s2714_s12  }
   0x3   : > { %p27_p1 = scmp.ge.s32.totalorder %s25_s15, 2  ;;  %p168_p2 = scmp.lt.s32.totalorder %s2218_s14, 3 }
   0x5   : > { %s2717_s15 = smov (%p27_p1, %s25_s15), 0  ;;  %p169_p3 = pnand %p1720_p0, %p168_p2 }
   0x6   : > { %v2155_v0 = vld [vmem:[%s2711_s1 + $0x10] sm:$0xff] (!%p169_p3)   ;;  %v2220_v1 = vmov (!%p169_p3), 0.0   ;;  %v2156_v2 = vld [vmem:[%s2711_s1 + $0x18] sm:$0xff] (!%p169_p3)   ;;  %p202_p4 = scmp.lt.s32.totalorder (!%p169_p3), %s2210_s12, 1  ;;  %vm2221_vm0 = vmmov (!%p169_p3), 0   ;;  %vm328_vm2 = vcmask (!%p169_p3), 261120  }
   0x7   : > { %172 = sbr.rel (%p169_p3) target bundleno = 423 (0x1a7), region = 32  ;;  %1907 = vmatprep.subr.bf16.mxu0 (!%p169_p3), %v2220_v1  ;;  %2123 = vmatprep.subr.bf16.mxu1 (!%p169_p3), %v2220_v1  ;;  %vm271_vm1 = vsmask.f32 (!%p169_p3), 7424  ;;  %v2161_v21 = vld [vmem:[%s2711_s1 + $0x20] sm:$0xff] (!%p169_p3)   ;;  %v2165_v33 = vld [vmem:[%s2711_s1 + $0x28] sm:$0xff] (!%p169_p3)   ;;  %v2167_v48 = vld [vmem:[%s2711_s1 + $0x30] sm:$0xff] (!%p169_p3)  }
   0x8   : > { %1908 = vmatpush3.bf16.msra.mxu0 (!%p169_p3), %v2155_v0  ;;  %2125 = vmatpush3.bf16.msra.mxu1 (!%p169_p3), %v2155_v0  ;;  %v2162_v27 = vld [vmem:[%s2711_s1] sm:$0xff] (!%p169_p3)   ;;  %v2166_v36 = vld [vmem:[%s2711_s1 + $0x8] sm:$0xff] (!%p169_p3)   ;;  %vm521_vm3 = vcmask (!%p169_p3), 1046528   ;;  %v2170_v52 = vld [vmem:[%s2711_s1 + $0x38] sm:$0xff] (!%p169_p3)   ;;  %vm817_vm4 = vsmask.f32 (!%p169_p3), 6400 }
   0x9   : > { %1909 = vmatprep.subr.bf16.mxu0 (!%p169_p3), %v2220_v1  ;;  %2124 = vmatprep.subr.bf16.mxu1 (!%p169_p3), %v2220_v1  ;;  %v2169_v54 = vld [vmem:[%s2711_s1 + $0x40] sm:$0xff] (!%p169_p3)   ;;  %v2171_v56 = vld [vmem:[%s2711_s1 + $0x48] sm:$0xff] (!%p169_p3)   ;;  %vm990_vm5 = vcmask (!%p169_p3), 1045504   ;;  %vm1286_vm6 = vsmask.f32 (!%p169_p3), 5376  ;;  %vm1459_vm7 = vcmask (!%p169_p3), 1044480  }
   0xa   : > { %1911 = vmatprep.mubr.msk.bf16.mxu0 (!%p169_p3), %vm2221_vm0, %v2220_v1  ;;  %1923 = vmatprep.mubr.msk.bf16.mxu1 (!%p169_p3), %vm2221_vm0, %v2220_v1  ;;  %vm1598_vm8 = vcmask (!%p169_p3), 523264  }
   0xc   : > { %1910 = vmatpush3.bf16.msra.mxu0 (!%p169_p3), %v2156_v2  ;;  %2126 = vmatpush3.bf16.msra.mxu1 (!%p169_p3), %v2156_v2 }
   0xd   : > { %1955 = vmatprep.subr.bf16.mxu0 (!%p169_p3), %v2220_v1  ;;  %1931 = vmatprep.subr.bf16.mxu1 (!%p169_p3), %v2220_v1 }
   0xe   : > { %s2719_s12 = smov (!%p202_p4, %s2210_s12), 1 }
   0xf   : > { %s2127_s20 = smul.u32 56, %s2719_s12 }
  0x11   : > { %s2282_s23 = scalar_lea.vmem %s2710_s0, %s2127_s20 }
  0x12   : > { %v223_v3 = vld [vmem:[%s2282_s23] sm:$0xf]  ;;  %v2286_v4 = vld [vmem:[%s2282_s23 + $0x4] sm:$0xf]  ;;  %v2292_v6 = vld [vmem:[%s2282_s23 + $0x8] sm:$0xff]  }
  0x13   : > { %v2289_v5 = vcombine.low %v223_v3, %v2286_v4  ;;  %v280_v9 = vshll.u32 %v2292_v6, 16  ;;  %v2298_v10 = vld [vmem:[%s2282_s23 + $0x18] sm:$0xff]   ;;  %v2301_v11 = vld [vmem:[%s2282_s23 + $0x20] sm:$0xff]   ;;  %v2304_v12 = vld [vmem:[%s2282_s23 + $0x10] sm:$0xff]   ;;  %v284_v22 = vshrl.u32 %v2292_v6, 16  ;;  %v523_v51 = vrot.slane %v2292_v6, 1 }
  0x14   : > { %v296_v15 = vshll.u32 %v2298_v10, 16  ;;  %v300_v16 = vshrl.u32 %v2298_v10, 16  ;;  %v304_v17 = vshll.u32 %v2301_v11, 16  ;;  %v2310_v18 = vld [vmem:[%s2282_s23 + $0x28] ss:$0 sps:$4 sm:$0x11]  }
  0x15   : > { %v273_v7 = vshrl.u32 %v2289_v5, 16  ;;  %v275_v8 = vshll.u32 %v2289_v5, 16  ;;  %v282_v14 = vrot.slane %v280_v9, 1  ;;  %v288_v23 = vshll.u32 %v2304_v12, 16  ;;  %v512_v41 = vld [vmem:[%s2282_s23] sm:$0xe] }
  0x16   : > { %v298_v20 = vrot.slane %v296_v15, 1  ;;  %v306_v24 = vrot.slane %v304_v17, 1  ;;  %v308_v28 = vshrl.u32 %v2301_v11, 16  ;;  %v312_v29 = vshll.u32 %v2310_v18, 16  ;;  %v2349_v42 = vld [vmem:[%s2282_s23 + $0x24] sm:$0xff]   ;;  %v2420_v2 = vld [vmem:[%s2282_s23 + $0xc] sm:$0xff]  }
  0x17   : > { %v277_v13 = vrot.slane %v275_v8, 1  ;;  %v286_v31 = vor.u32 %v284_v22, %v282_v14  ;;  %v290_v32 = vrot.slane %v288_v23, 1  ;;  %v292_v38 = vshrl.u32 %v2304_v12, 16  ;;  %v2181_v43 = vld [vmem:[%s2282_s23 + $0x2c] ss:$0 sps:$4 sm:$0x11]  }
  0x18   : > { %v302_v26 = vor.u32 %v300_v16, %v298_v20  ;;  %v310_v34 = vor.u32 %v308_v28, %v306_v24  ;;  %v314_v35 = vrot.slane %v312_v29, 1  ;;  %v1751_v45 = vcombine.low %v512_v41, %v2286_v4  ;;  %v643_v61 = vld [vmem:[%s2282_s23 + $0x4] sm:$0xe]  ;;  %v2415_v62 = vld [vmem:[%s2282_s23 + $0x8] sm:$0xf]  ;;  %v2174_v17 = vld [vmem:[%s2711_s1 + $0x50] sm:$0xff]  }
  0x19   : > { %v278_v19 = vor.u32 %v277_v13, %v273_v7  ;;  %v291_v37 = vsel %vm271_vm1, %v286_v31, %v290_v32  ;;  %v294_v40 = vor.u32 %v292_v38, %v290_v32  ;;  %v694_v46 = vrot.slane %v2349_v42, 1  ;;  %v2179_v23 = vld [vmem:[%s2711_s1 + $0x58] sm:$0xff]  }
  0x1a   : > { %v307_v30 = vsel %vm271_vm1, %v302_v26, %v306_v24  ;;  %v315_v39 = vsel %vm271_vm1, %v310_v34, %v314_v35  ;;  %v696_v47 = vrot.slane %v2181_v43, 1  ;;  %v522_v50 = vrot.slane %v1751_v45, 1  ;;  %v2460_v29 = vld [vmem:[%s2282_s23 + $0x1c] sm:$0xff]  }
  0x1b   : > { %v283_v25 = vsel %vm271_vm1, %v278_v19, %v282_v14  ;;  %1924 = vmatmul.mubr.msk.bf16.vlgmr.msra.gmra.mrb[0].mxu1 %vm328_vm2, %v307_v30  ;;  %v299_v44 = vsel %vm271_vm1, %v294_v40, %v298_v20  ;;  %v525_v55 = vrot.slane %v2304_v12, 1  ;;  %v527_v58 = vrot.slane %v2298_v10, 1 }
  0x1c   : > { %1912 = vmatmul.mubr.msk.bf16.vlgmr.msra.gmra.mrb[0].mxu0 %vm328_vm2, %v283_v25  ;;  %1932 = vmatpush3.bf16.msra.mxu1 %v2162_v27  ;;  %v2364_v49 = vsel %vm521_vm3, %v694_v46, %v696_v47  ;;  %v524_v53 = vsel %vm521_vm3, %v522_v50, %v523_v51  ;;  %v529_v60 = vrot.slane %v2301_v11, 1  ;;  %v1763_v0 = vcombine.low %v643_v61, %v2415_v62  ;;  %v2176_v25 = vld [vmem:[%s2711_s1 + $0x60] sm:$0xff]   ;;  %v2489_v47 = vld [vmem:[%s2282_s23 + $0x2c] ss:$0 sps:$4 sm:$0x33]  }
  0x1d   : > { %1956 = vmatpush3.bf16.msra.mxu0 %v2161_v21  ;;  %1915 = vmatprep.mubr.msk.bf16.mxu0 %vm2221_vm0, %v2220_v1  ;;  %v526_v57 = vsel %vm521_vm3, %v523_v51, %v525_v55  ;;  %v528_v59 = vsel %vm521_vm3, %v525_v55, %v527_v58  ;;  %v531_v3 = vrot.slane %v2310_v18, 1  ;;  %v830_v7 = vshll.u32 %v2420_v2, 16  ;;  %v2439_v18 = vld [vmem:[%s2282_s23 + $0x14] sm:$0xff]  }
  0x1e   : > { %1957 = vmatprep.subr.bf16.mxu0 %v2220_v1  ;;  %1927 = vmatprep.mubr.msk.bf16.mxu1 %vm2221_vm0, %v2220_v1  ;;  %v530_v63 = vsel %vm521_vm3, %v527_v58, %v529_v60  ;;  %v819_v4 = vshrl.u32 %v1763_v0, 16  ;;  %v687_v8 = vrot.slane %v1763_v0, 1  ;;  %v688_v9 = vrot.slane %v2420_v2, 1  ;;  %v1112_v58 = vld [vmem:[%s2282_s23 + $0x8] sm:$0xc] }
  0x1f   : > { %1933 = vmatprep.subr.bf16.mxu1 %v2220_v1  ;;  %v832_v15 = vrot.slane %v830_v7, 2  ;;  %v836_v20 = vshrl.u32 %v2439_v18, 16  ;;  %v839_v21 = vshll.u32 %v2439_v18, 16  ;;  %v690_v22 = vrot.slane %v2439_v18, 1 }
  0x20   : > { %1934 = vmatpush3.bf16.msra.mxu1 %v2166_v36  ;;  %v689_v16 = vsel %vm521_vm3, %v687_v8, %v688_v9  ;;  %v845_v31 = vshrl.u32 %v2460_v29, 16  ;;  %v848_v32 = vshll.u32 %v2460_v29, 16  ;;  %v692_v34 = vrot.slane %v2460_v29, 1  ;;  %v2187_v8 = vld [vmem:[%s2711_s1 + $0x80] sm:$0xff]  }
  0x21   : > { %1958 = vmatpush3.bf16.msra.mxu0 %v2165_v33  ;;  %1979 = vmatprep.subr.bf16.mxu1 %v2220_v1  ;;  %v838_v26 = vrot.slane %v836_v20, 1  ;;  %v841_v27 = vrot.slane %v839_v21, 2  ;;  %v691_v28 = vsel %vm521_vm3, %v688_v9, %v690_v22  ;;  %v2180_v33 = vld [vmem:[%s2711_s1 + $0x68] sm:$0xff]   ;;  %v854_v40 = vshrl.u32 %v2349_v42, 16  ;;  %v2543_v9 = vld [vmem:[%s2282_s23 + $0x18] sm:$0xff]  }
  0x22   : > { %2003 = vmatprep.subr.bf16.mxu0 %v2220_v1  ;;  %v847_v36 = vrot.slane %v845_v31, 1  ;;  %v693_v38 = vsel %vm521_vm3, %v690_v22, %v692_v34  ;;  %v857_v41 = vshll.u32 %v2349_v42, 16  ;;  %v863_v51 = vshrl.u32 %v2489_v47, 16  ;;  %v2573_v20 = vld [vmem:[%s2282_s23 + $0x28] sm:$0xff]  }
  0x23   : > { %1928 = vmatmul.mubr.msk.bf16.gmra.mrb[4].mxu1 %vm328_vm2, %v315_v39  ;;  %v842_v30 = vor.u32 %v841_v27, %v838_v26  ;;  %v992_v61 = vrot.slane %v2420_v2, 2  ;;  %v1163_v22 = vrot.slane %v2573_v20, 2 }
  0x24   : > { %1916 = vmatmul.mubr.msk.bf16.gmra.mrb[4].mxu0 %vm328_vm2, %v291_v37  ;;  %1935 = vmatprep.mubr.msk.bf16.mxu1 %vm2221_vm0, %v2220_v1  ;;  %v850_v37 = vrot.slane %v848_v32, 2  ;;  %v859_v45 = vrot.slane %v857_v41, 2 }
  0x25   : > { %1919 = vmatprep.mubr.msk.bf16.mxu0 %vm2221_vm0, %v2220_v1 }
  0x26   : > { %v851_v39 = vor.u32 %v850_v37, %v847_v36 }
  0x28   : > { %v852_v43 = vsel %vm817_vm4, %v842_v30, %v851_v39 }
  0x2b   : > { %1936 = vmatmul.mubr.msk.bf16.vlgmr.msra.gmra.mrb[8].mxu1 %vm328_vm2, %v2289_v5  ;;  %v822_v5 = vshll.u32 %v1763_v0, 16  ;;  %v2520_v0 = vld [vmem:[%s2282_s23 + $0x10] sm:$0xff]  }
  0x2c   : > { %1920 = vmatmul.mubr.msk.bf16.gmra.mrb[8].mxu0 %vm328_vm2, %v299_v44  ;;  %1980 = vmatpush3.bf16.msra.mxu1 %v2167_v48  ;;  %v856_v44 = vrot.slane %v854_v40, 1  ;;  %v695_v48 = vsel %vm521_vm3, %v692_v34, %v694_v46  ;;  %v1299_v26 = vshll.u32 %v2520_v0, 16 }
  0x2d   : > { %1959 = vmatprep.mubr.msk.bf16.mxu0 %vm2221_vm0, %v2220_v1  ;;  %1939 = vmatprep.mubr.msk.bf16.mxu1 %vm2221_vm0, %v2220_v1  ;;  %v824_v13 = vrot.slane %v822_v5, 2  ;;  %v994_v5 = vrot.slane %v2439_v18, 2 }
  0x2e   : > { %1981 = vmatprep.subr.bf16.mxu1 %v2220_v1  ;;  %v860_v50 = vor.u32 %v859_v45, %v856_v44 }
  0x30   : > { %1982 = vmatpush3.bf16.msra.mxu1 %v2170_v52  ;;  %v866_v52 = vshll.u32 %v2489_v47, 16  ;;  %v861_v46 = vsel %vm817_vm4, %v851_v39, %v860_v50  ;;  %v1308_v39 = vshll.u32 %v2543_v9, 16 }
  0x31   : > { %2027 = vmatprep.subr.bf16.mxu1 %v2220_v1 }
  0x32   : > { %v868_v55 = vrot.slane %v866_v52, 2  ;;  %v1310_v45 = vrot.slane %v1308_v39, 3 }
  0x33   : > { %1940 = vmatmul.mubr.msk.bf16.gmra.mrb[12].mxu1 %vm328_vm2, %v2292_v6  ;;  %v827_v6 = vshrl.u32 %v2420_v2, 16 }
  0x34   : > { %1960 = vmatmul.mubr.msk.bf16.vlgmr.msra.gmra.mrb[12].mxu0 %vm328_vm2, %v524_v53  ;;  %1943 = vmatprep.mubr.msk.bf16.mxu1 %vm2221_vm0, %v2220_v1  ;;  %v981_v53 = vld [vmem:[%s2282_s23 + $0x4] sm:$0xc] }
  0x35   : > { %2004 = vmatpush3.bf16.msra.mxu0 %v2169_v54  ;;  %1963 = vmatprep.mubr.msk.bf16.mxu0 %vm2221_vm0, %v2220_v1  ;;  %v829_v14 = vrot.slane %v827_v6, 1  ;;  %v865_v54 = vrot.slane %v863_v51, 1  ;;  %v2190_v6 = vld [vmem:[%s2711_s1 + $0x78] sm:$0xff]  }
  0x36   : > { %2005 = vmatprep.subr.bf16.mxu0 %v2220_v1 }
  0x37   : > { %v833_v19 = vor.u32 %v832_v15, %v829_v14  ;;  %v996_v14 = vrot.slane %v2460_v29, 2 }
  0x39   : > { %2006 = vmatpush3.bf16.msra.mxu0 %v2171_v56  ;;  %v843_v35 = vsel %vm817_vm4, %v833_v19, %v842_v30  ;;  %v1792_v56 = vcombine.low %v981_v53, %v2415_v62 }
  0x3a   : > { %2051 = vmatprep.subr.bf16.mxu0 %v2220_v1 }
  0x3b   : > { %1944 = vmatmul.mubr.msk.bf16.gmra.mrb[16].mxu1 %vm328_vm2, %v2304_v12  ;;  %v821_v12 = vrot.slane %v819_v4, 1  ;;  %v1157_v4 = vrot.slane %v2520_v0, 2 }
  0x3c   : > { %1964 = vmatmul.mubr.msk.bf16.gmra.mrb[16].mxu0 %vm328_vm2, %v526_v57  ;;  %1947 = vmatprep.mubr.msk.bf16.mxu1 %vm2221_vm0, %v2220_v1  ;;  %v869_v57 = vor.u32 %v868_v55, %v865_v54 }
  0x3d   : > { %1967 = vmatprep.mubr.msk.bf16.mxu0 %vm2221_vm0, %v2220_v1 }
  0x3e   : > { %v870_v62 = vsel %vm817_vm4, %v860_v50, %v869_v57 }
  0x43   : > { %1948 = vmatmul.mubr.msk.bf16.gmra.mrb[20].mxu1 %vm328_vm2, %v2298_v10  ;;  %v532_v10 = vsel %vm521_vm3, %v529_v60, %v531_v3  ;;  %v991_v60 = vrot.slane %v1792_v56, 2  ;;  %v1463_v56 = vrot.slane %v2543_v9, 3 }
  0x44   : > { %1968 = vmatmul.mubr.msk.bf16.gmra.mrb[20].mxu0 %vm328_vm2, %v528_v59  ;;  %1951 = vmatprep.mubr.msk.bf16.mxu1 %vm2221_vm0, %v2220_v1  ;;  %v2512_v59 = vld [vmem:[%s2282_s23 + $0xc] sm:$0xf] }
  0x45   : > { %1971 = vmatprep.mubr.msk.bf16.mxu0 %vm2221_vm0, %v2220_v1  ;;  %v993_v3 = vsel %vm990_vm5, %v991_v60, %v992_v61 }
  0x4b   : > { %1952 = vmatmul.mubr.msk.bf16.gmra.mrb[24].mxu1 %vm328_vm2, %v2301_v11  ;;  %v825_v11 = vor.u32 %v824_v13, %v821_v12  ;;  %v1159_v12 = vrot.slane %v2543_v9, 2  ;;  %v2191_v13 = vld [vmem:[%s2711_s1 + $0x88] sm:$0xff]  }
  0x4c   : > { %1972 = vmatmul.mubr.msk.bf16.gmra.mrb[24].mxu0 %vm328_vm2, %v530_v63  ;;  %1983 = vmatprep.mubr.msk.bf16.mxu1 %vm2221_vm0, %v2220_v1  ;;  %v1804_v63 = vcombine.low %v1112_v58, %v2512_v59  ;;  %v1323_v58 = vshrl.u32 %v2573_v20, 16 }
  0x4d   : > { %1975 = vmatprep.mubr.msk.bf16.mxu0 %vm2221_vm0, %v2220_v1  ;;  %v834_v24 = vsel %vm817_vm4, %v825_v11, %v833_v19  ;;  %v1160_v15 = vsel %vm990_vm5, %v1157_v4, %v1159_v12  ;;  %v998_v11 = vrot.slane %v2349_v42, 2 }
  0x4e   : > { %v1156_v2 = vrot.slane %v1804_v63, 2  ;;  %v1288_v42 = vshrl.u32 %v1804_v63, 16 }
  0x4f   : > { %v999_v21 = vsel %vm990_vm5, %v996_v14, %v998_v11 }
  0x50   : > { %v1158_v7 = vsel %vm990_vm5, %v1156_v2, %v1157_v4  ;;  %v1290_v30 = vrot.slane %v1288_v42, 2 }
  0x53   : > { %1984 = vmatmul.mubr.msk.bf16.vlgmr.msra.gmra.mrb[28].mxu1 %vm328_vm2, %v689_v16  ;;  %v2560_v16 = vld [vmem:[%s2282_s23 + $0x20] sm:$0xff]  }
  0x54   : > { %1976 = vmatmul.mubr.msk.bf16.gmra.mrb[28].mxu0 %vm328_vm2, %v532_v10  ;;  %2028 = vmatpush3.bf16.msra.mxu1 %v2174_v17  ;;  %v995_v10 = vsel %vm990_vm5, %v992_v61, %v994_v5  ;;  %v997_v17 = vsel %vm990_vm5, %v994_v5, %v996_v14  ;;  %v1161_v18 = vrot.slane %v2560_v16, 2  ;;  %v1314_v51 = vshrl.u32 %v2560_v16, 16 }
  0x55   : > { %2007 = vmatprep.mubr.msk.bf16.mxu0 %vm2221_vm0, %v2220_v1  ;;  %1987 = vmatprep.mubr.msk.bf16.mxu1 %vm2221_vm0, %v2220_v1  ;;  %v1317_v52 = vshll.u32 %v2560_v16, 16 }
  0x56   : > { %2029 = vmatprep.subr.bf16.mxu1 %v2220_v1  ;;  %v1162_v19 = vsel %vm990_vm5, %v1159_v12, %v1161_v18  ;;  %v1164_v27 = vsel %vm990_vm5, %v1161_v18, %v1163_v22  ;;  %v1316_v54 = vrot.slane %v1314_v51, 2 }
  0x57   : > { %v1319_v55 = vrot.slane %v1317_v52, 3 }
  0x58   : > { %2030 = vmatpush3.bf16.msra.mxu1 %v2179_v23  ;;  %v1000_v23 = vrot.slane %v2489_v47, 2 }
  0x59   : > { %2075 = vmatprep.subr.bf16.mxu1 %v2220_v1  ;;  %v1320_v57 = vor.u32 %v1319_v55, %v1316_v54 }
  0x5a   : > { %v1001_v29 = vsel %vm990_vm5, %v998_v11, %v1000_v23 }
  0x5b   : > { %1988 = vmatmul.mubr.msk.bf16.gmra.mrb[32].mxu1 %vm328_vm2, %v691_v28  ;;  %v2193_v28 = vld [vmem:[%s2282_s23 + $0x30] ss:$0 sps:$4 sm:$0x33]  }
  0x5c   : > { %2008 = vmatmul.mubr.msk.bf16.vlgmr.msra.gmra.mrb[32].mxu0 %vm328_vm2, %v834_v24  ;;  %1991 = vmatprep.mubr.msk.bf16.mxu1 %vm2221_vm0, %v2220_v1  ;;  %v1291_v24 = vshll.u32 %v1804_v63, 16  ;;  %v1165_v34 = vrot.slane %v2193_v28, 2 }
  0x5d   : > { %2052 = vmatpush3.bf16.msra.mxu0 %v2176_v25  ;;  %2011 = vmatprep.mubr.msk.bf16.mxu0 %vm2221_vm0, %v2220_v1  ;;  %v1296_v25 = vshrl.u32 %v2520_v0, 16 }
  0x5e   : > { %2053 = vmatprep.subr.bf16.mxu0 %v2220_v1  ;;  %v1293_v31 = vrot.slane %v1291_v24, 3  ;;  %v1166_v40 = vsel %vm990_vm5, %v1163_v22, %v1165_v34 }
  0x5f   : > { %v1298_v32 = vrot.slane %v1296_v25, 2 }
  0x60   : > { %v1294_v36 = vor.u32 %v1293_v31, %v1290_v30 }
  0x61   : > { %2054 = vmatpush3.bf16.msra.mxu0 %v2180_v33  ;;  %v1301_v33 = vrot.slane %v1299_v26, 3 }
  0x62   : > { %2099 = vmatprep.subr.bf16.mxu0 %v2220_v1 }
  0x63   : > { %1992 = vmatmul.mubr.msk.bf16.gmra.mrb[36].mxu1 %vm328_vm2, %v693_v38  ;;  %v1302_v37 = vor.u32 %v1301_v33, %v1298_v32  ;;  %v1305_v38 = vshrl.u32 %v2543_v9, 16  ;;  %v1467_v9 = vrot.slane %v2573_v20, 3 }
  0x64   : > { %2012 = vmatmul.mubr.msk.bf16.gmra.mrb[36].mxu0 %vm328_vm2, %v843_v35  ;;  %1995 = vmatprep.mubr.msk.bf16.mxu1 %vm2221_vm0, %v2220_v1  ;;  %v1450_v35 = vld [vmem:[%s2282_s23 + $0x8] sm:$0x8] }
  0x65   : > { %2015 = vmatprep.mubr.msk.bf16.mxu0 %vm2221_vm0, %v2220_v1  ;;  %v1833_v41 = vcombine.low %v1450_v35, %v2512_v59  ;;  %v1307_v44 = vrot.slane %v1305_v38, 2  ;;  %v1326_v59 = vshll.u32 %v2573_v20, 16 }
  0x67   : > { %v1460_v47 = vrot.slane %v1833_v41, 3  ;;  %v1311_v50 = vor.u32 %v1310_v45, %v1307_v44  ;;  %v1328_v63 = vrot.slane %v1326_v59, 3 }
  0x69   : > { %v1321_v61 = vsel %vm1286_vm6, %v1311_v50, %v1320_v57 }
  0x6b   : > { %1996 = vmatmul.mubr.msk.bf16.gmra.mrb[40].mxu1 %vm328_vm2, %v695_v48  ;;  %v1461_v48 = vrot.slane %v2520_v0, 3  ;;  %v2195_v0 = vld [vmem:[%s2282_s23 + $0x30] ss:$0 sps:$4 sm:$0x77]   ;;  %s2128_s23 = smul.u32 80, %s2719_s12 }
  0x6c   : > { %2016 = vmatmul.mubr.msk.bf16.gmra.mrb[40].mxu0 %vm328_vm2, %v852_v43  ;;  %1999 = vmatprep.mubr.msk.bf16.mxu1 %vm2221_vm0, %v2220_v1  ;;  %v1303_v43 = vsel %vm1286_vm6, %v1294_v36, %v1302_v37  ;;  %v1332_v2 = vshrl.u32 %v2195_v0, 16  ;;  %v1335_v4 = vshll.u32 %v2195_v0, 16  ;;  %v1469_v14 = vrot.slane %v2195_v0, 3 }
  0x6d   : > { %2019 = vmatprep.mubr.msk.bf16.mxu0 %vm2221_vm0, %v2220_v1  ;;  %v1462_v53 = vsel %vm1459_vm7, %v1460_v47, %v1461_v48  ;;  %v1464_v60 = vsel %vm1459_vm7, %v1461_v48, %v1463_v56  ;;  %s2665_s11 = scalar_lea.vmem %s2713_s3, %s2128_s23 }
  0x73   : > { %2000 = vmatmul.mubr.msk.bf16.gmra.mrb[44].mxu1 %vm328_vm2, %v2364_v49  ;;  %v2184_v49 = vld [vmem:[%s2711_s1 + $0x70] sm:$0xff]  }
  0x74   : > { %2020 = vmatmul.mubr.msk.bf16.gmra.mrb[44].mxu0 %vm328_vm2, %v861_v46  ;;  %2031 = vmatprep.mubr.msk.bf16.mxu1 %vm2221_vm0, %v2220_v1  ;;  %v1312_v46 = vsel %vm1286_vm6, %v1302_v37, %v1311_v50 }
  0x75   : > { %2023 = vmatprep.mubr.msk.bf16.mxu0 %vm2221_vm0, %v2220_v1 }
  0x7b   : > { %2032 = vmatmul.mubr.msk.bf16.vlgmr.msra.gmra.mrb[48].mxu1 %vm328_vm2, %v993_v3  ;;  %v1465_v3 = vrot.slane %v2560_v16, 3 }
  0x7c   : > { %2024 = vmatmul.mubr.msk.bf16.gmra.mrb[48].mxu0 %vm328_vm2, %v870_v62  ;;  %2076 = vmatpush3.bf16.msra.mxu1 %v2184_v49  ;;  %v1325_v62 = vrot.slane %v1323_v58, 2 }
  0x7d   : > { %2055 = vmatprep.mubr.msk.bf16.mxu0 %vm2221_vm0, %v2220_v1  ;;  %2035 = vmatprep.mubr.msk.bf16.mxu1 %vm2221_vm0, %v2220_v1  ;;  %v1466_v5 = vsel %vm1459_vm7, %v1463_v56, %v1465_v3  ;;  %v1468_v12 = vsel %vm1459_vm7, %v1465_v3, %v1467_v9 }
  0x7e   : > { %2077 = vmatprep.subr.bf16.mxu1 %v2220_v1  ;;  %v1329_v49 = vor.u32 %v1328_v63, %v1325_v62 }
  0x80   : > { %2078 = vmatpush3.bf16.msra.mxu1 %v2190_v6  ;;  %v1330_v6 = vsel %vm1286_vm6, %v1320_v57, %v1329_v49 }
  0x83   : > { %2036 = vmatmul.mubr.msk.bf16.gmra.mrb[52].mxu1 %vm328_vm2, %v995_v10 }
  0x84   : > { %2056 = vmatmul.mubr.msk.bf16.vlgmr.msra.gmra.mrb[52].mxu0 %vm328_vm2, %v1158_v7  ;;  %2039 = vmatprep.mubr.msk.bf16.mxu1 %vm2221_vm0, %v2220_v1  ;;  %v1334_v7 = vrot.slane %v1332_v2, 2 }
  0x85   : > { %2100 = vmatpush3.bf16.msra.mxu0 %v2187_v8  ;;  %2059 = vmatprep.mubr.msk.bf16.mxu0 %vm2221_vm0, %v2220_v1  ;;  %v1337_v8 = vrot.slane %v1335_v4, 3 }
  0x86   : > { %2101 = vmatprep.subr.bf16.mxu0 %v2220_v1 }
  0x87   : > { %v1338_v10 = vor.u32 %v1337_v8, %v1334_v7 }
  0x89   : > { %2102 = vmatpush3.bf16.msra.mxu0 %v2191_v13  ;;  %v1339_v13 = vsel %vm1286_vm6, %v1329_v49, %v1338_v10 }
  0x8b   : > { %2040 = vmatmul.mubr.msk.bf16.gmra.mrb[56].mxu1 %vm328_vm2, %v997_v17 }
  0x8c   : > { %2060 = vmatmul.mubr.msk.bf16.gmra.mrb[56].mxu0 %vm328_vm2, %v1160_v15  ;;  %2043 = vmatprep.mubr.msk.bf16.mxu1 %vm2221_vm0, %v2220_v1  ;;  %v1470_v15 = vsel %vm1459_vm7, %v1467_v9, %v1469_v14 }
  0x8d   : > { %2063 = vmatprep.mubr.msk.bf16.mxu0 %vm2221_vm0, %v2220_v1 }
  0x93   : > { %2044 = vmatmul.mubr.msk.bf16.gmra.mrb[60].mxu1 %vm328_vm2, %v999_v21 }
  0x94   : > { %2064 = vmatmul.mubr.msk.bf16.gmra.mrb[60].mxu0 %vm328_vm2, %v1162_v19  ;;  %2047 = vmatprep.mubr.msk.bf16.mxu1 %vm2221_vm0, %v2220_v1 }
  0x95   : > { %2067 = vmatprep.mubr.msk.bf16.mxu0 %vm2221_vm0, %v2220_v1 }
  0x9b   : > { %2048 = vmatmul.mubr.msk.bf16.gmra.mrb[64].mxu1 %vm328_vm2, %v1001_v29 }
  0x9c   : > { %2068 = vmatmul.mubr.msk.bf16.gmra.mrb[64].mxu0 %vm328_vm2, %v1164_v27  ;;  %2079 = vmatprep.mubr.msk.bf16.mxu1 %vm2221_vm0, %v2220_v1 }
  0x9d   : > { %2071 = vmatprep.mubr.msk.bf16.mxu0 %vm2221_vm0, %v2220_v1 }
  0xa3   : > { %2080 = vmatmul.mubr.msk.bf16.vlgmr.msra.gmra.mrb[68].mxu1 %vm328_vm2, %v1303_v43 }
  0xa4   : > { %2072 = vmatmul.mubr.msk.bf16.gmra.mrb[68].mxu0 %vm328_vm2, %v1166_v40  ;;  %2083 = vmatprep.mubr.msk.bf16.mxu1 %vm2221_vm0, %v2220_v1 }
  0xa5   : > { %2103 = vmatprep.mubr.msk.bf16.mxu0 %vm2221_vm0, %v2220_v1 }
  0xab   : > { %2084 = vmatmul.mubr.msk.bf16.gmra.mrb[72].mxu1 %vm328_vm2, %v1312_v46 }
  0xac   : > { %2104 = vmatmul.mubr.msk.bf16.vlgmr.msra.gmra.mrb[72].mxu0 %vm328_vm2, %v1462_v53  ;;  %2087 = vmatprep.mubr.msk.bf16.mxu1 %vm2221_vm0, %v2220_v1 }
  0xad   : > { %2107 = vmatprep.mubr.msk.bf16.mxu0 %vm2221_vm0, %v2220_v1 }
  0xb3   : > { %2088 = vmatmul.mubr.msk.bf16.gmra.mrb[76].mxu1 %vm328_vm2, %v1321_v61 }
  0xb4   : > { %2108 = vmatmul.mubr.msk.bf16.gmra.mrb[76].mxu0 %vm328_vm2, %v1464_v60  ;;  %2091 = vmatprep.mubr.msk.bf16.mxu1 %vm2221_vm0, %v2220_v1 }
  0xb5   : > { %2111 = vmatprep.mubr.msk.bf16.mxu0 %vm2221_vm0, %v2220_v1 }
  0xbb   : > { %2092 = vmatmul.mubr.msk.bf16.gmra.mrb[80].mxu1 %vm328_vm2, %v1330_v6 }
  0xbc   : > { %2112 = vmatmul.mubr.msk.bf16.gmra.mrb[80].mxu0 %vm328_vm2, %v1466_v5  ;;  %2095 = vmatprep.mubr.msk.bf16.mxu1 %vm2221_vm0, %v2220_v1 }
  0xbd   : > { %2115 = vmatprep.mubr.msk.bf16.mxu0 %vm2221_vm0, %v2220_v1 }
  0xc3   : > { %2096 = vmatmul.mubr.msk.bf16.gmra.mrb[84].mxu1 %vm328_vm2, %v1339_v13 }
  0xc4   : > { %2116 = vmatmul.mubr.msk.bf16.gmra.mrb[84].mxu0 %vm328_vm2, %v1468_v12 }
  0xc5   : > { %2119 = vmatprep.mubr.msk.bf16.mxu0 %vm2221_vm0, %v2220_v1 }
  0xcc   : > { %2120 = vmatmul.mubr.msk.bf16.gmra.mrb[88].mxu0 %vm328_vm2, %v1470_v15 }
  0xee   : > { %v402_v11 = vpop.f32.mrb[0].mxu1 }
  0xef   : > { %v378_v16 = vpop.f32.mrb[0].mxu0  ;;  %v1925_v20 = vpop.f32.mrb[1].mxu1 }
  0xf0   : > { %v1913_v17 = vpop.f32.mrb[1].mxu0  ;;  %v405_v21 = vpop.f32.mrb[2].mxu1 }
  0xf1   : > { %v381_v18 = vpop.f32.mrb[2].mxu0  ;;  %v1926_v22 = vpop.f32.mrb[3].mxu1 }
  0xf2   : > { %v1914_v19 = vpop.f32.mrb[3].mxu0 }
  0xf6   : > { %v410_v25 = vpop.f32.mrb[4].mxu1 }
  0xf7   : > { %v386_v23 = vpop.f32.mrb[4].mxu0  ;;  %v1929_v26 = vpop.f32.mrb[5].mxu1 }
  0xf8   : > { %v1917_v42 = vpop.f32.mrb[5].mxu0  ;;  %v413_v27 = vpop.f32.mrb[6].mxu1 }
  0xf9   : > { %v389_v24 = vpop.f32.mrb[6].mxu0  ;;  %v1930_v28 = vpop.f32.mrb[7].mxu1 }
  0xfa   : > { %v1918_v1 = vpop.f32.mrb[7].mxu0 }
  0xfe   : > { %v473_v31 = vpop.f32.mrb[8].mxu1 }
  0xff   : > { %v394_v29 = vpop.f32.mrb[8].mxu0  ;;  %v474_v33 = vadd.f32 %v473_v31, %v378_v16  ;;  %v1937_v34 = vpop.f32.mrb[9].mxu1 }
 0x100   : > { %v1921_v30 = vpop.f32.mrb[9].mxu0  ;;  %v476_v36 = vpop.f32.mrb[10].mxu1 }
 0x101   : > { %v397_v32 = vpop.f32.mrb[10].mxu0  ;;  %v477_v37 = vadd.f32 %v476_v36, %v381_v18  ;;  %v1938_v38 = vpop.f32.mrb[11].mxu1 }
 0x102   : > { %v1922_v35 = vpop.f32.mrb[11].mxu0 }
 0x106   : > { %v481_v43 = vpop.f32.mrb[12].mxu1 }
 0x107   : > { %v594_v39 = vpop.f32.mrb[12].mxu0  ;;  %v482_v45 = vadd.f32 %v481_v43, %v386_v23  ;;  %v1941_v47 = vpop.f32.mrb[13].mxu1 }
 0x108   : > { %v633_v40 = vadd.f32 %v594_v39, %v474_v33  ;;  %v1961_v41 = vpop.f32.mrb[13].mxu0  ;;  %v484_v51 = vpop.f32.mrb[14].mxu1 }
 0x109   : > { %v597_v44 = vpop.f32.mrb[14].mxu0  ;;  %v485_v52 = vadd.f32 %v484_v51, %v389_v24  ;;  %v1942_v53 = vpop.f32.mrb[15].mxu1 }
 0x10a   : > { %v634_v48 = vadd.f32 %v597_v44, %v477_v37  ;;  %v1962_v50 = vpop.f32.mrb[15].mxu0 }
 0x10e   : > { %v489_v56 = vpop.f32.mrb[16].mxu1 }
 0x10f   : > { %v602_v46 = vpop.f32.mrb[16].mxu0  ;;  %v490_v58 = vadd.f32 %v489_v56, %v394_v29  ;;  %v1945_v59 = vpop.f32.mrb[17].mxu1 }
 0x110   : > { %v635_v54 = vadd.f32 %v602_v46, %v482_v45  ;;  %v1965_v55 = vpop.f32.mrb[17].mxu0  ;;  %v492_v62 = vpop.f32.mrb[18].mxu1 }
 0x111   : > { %v605_v57 = vpop.f32.mrb[18].mxu0  ;;  %v493_v63 = vadd.f32 %v492_v62, %v397_v32  ;;  %v1946_v0 = vpop.f32.mrb[19].mxu1 }
 0x112   : > { %v636_v60 = vadd.f32 %v605_v57, %v485_v52  ;;  %v1966_v61 = vpop.f32.mrb[19].mxu0 }
 0x116   : > { %v497_v4 = vpop.f32.mrb[20].mxu1 }
 0x117   : > { %v610_v3 = vpop.f32.mrb[20].mxu0  ;;  %v498_v6 = vadd.f32 %v497_v4, %v402_v11  ;;  %v1949_v7 = vpop.f32.mrb[21].mxu1 }
 0x118   : > { %v637_v49 = vadd.f32 %v610_v3, %v490_v58  ;;  %v1969_v2 = vpop.f32.mrb[21].mxu0  ;;  %v500_v10 = vpop.f32.mrb[22].mxu1 }
 0x119   : > { %v613_v5 = vpop.f32.mrb[22].mxu0  ;;  %v501_v12 = vadd.f32 %v500_v10, %v405_v21  ;;  %v1950_v13 = vpop.f32.mrb[23].mxu1 }
 0x11a   : > { %v638_v8 = vadd.f32 %v613_v5, %v493_v63  ;;  %v1970_v9 = vpop.f32.mrb[23].mxu0 }
 0x11e   : > { %v505_v17 = vpop.f32.mrb[24].mxu1 }
 0x11f   : > { %v618_v14 = vpop.f32.mrb[24].mxu0  ;;  %v506_v19 = vadd.f32 %v505_v17, %v410_v25  ;;  %v1953_v20 = vpop.f32.mrb[25].mxu1 }
 0x120   : > { %v639_v15 = vadd.f32 %v618_v14, %v498_v6  ;;  %v1973_v16 = vpop.f32.mrb[25].mxu0  ;;  %v508_v42 = vpop.f32.mrb[26].mxu1 }
 0x121   : > { %v621_v18 = vpop.f32.mrb[26].mxu0  ;;  %v509_v24 = vadd.f32 %v508_v42, %v413_v27  ;;  %v1954_v1 = vpop.f32.mrb[27].mxu1 }
 0x122   : > { %v640_v22 = vadd.f32 %v621_v18, %v501_v12  ;;  %v1974_v23 = vpop.f32.mrb[27].mxu0 }
 0x126   : > { %v759_v29 = vpop.f32.mrb[28].mxu1 }
 0x127   : > { %v626_v26 = vpop.f32.mrb[28].mxu0  ;;  %v798_v31 = vadd.f32 %v759_v29, %v633_v40  ;;  %v1985_v21 = vpop.f32.mrb[29].mxu1 }
 0x128   : > { %v641_v11 = vadd.f32 %v626_v26, %v506_v19  ;;  %v1977_v28 = vpop.f32.mrb[29].mxu0  ;;  %v762_v34 = vpop.f32.mrb[30].mxu1 }
 0x129   : > { %v629_v30 = vpop.f32.mrb[30].mxu0  ;;  %v799_v35 = vadd.f32 %v762_v34, %v634_v48  ;;  %v1986_v36 = vpop.f32.mrb[31].mxu1 }
 0x12a   : > { %v642_v32 = vadd.f32 %v629_v30, %v509_v24  ;;  %v1978_v33 = vpop.f32.mrb[31].mxu0 }
 0x12e   : > { %v767_v39 = vpop.f32.mrb[32].mxu1 }
 0x12f   : > { %v932_v37 = vpop.f32.mrb[32].mxu0  ;;  %v800_v43 = vadd.f32 %v767_v39, %v635_v54  ;;  %v1989_v27 = vpop.f32.mrb[33].mxu1 }
 0x130   : > { %v971_v25 = vadd.f32 %v932_v37, %v798_v31  ;;  %v2009_v38 = vpop.f32.mrb[33].mxu0  ;;  %v770_v47 = vpop.f32.mrb[34].mxu1 }
 0x131   : > { %v935_v41 = vpop.f32.mrb[34].mxu0  ;;  %v801_v50 = vadd.f32 %v770_v47, %v636_v60  ;;  %v1990_v51 = vpop.f32.mrb[35].mxu1 }
 0x132   : > { %v972_v44 = vadd.f32 %v935_v41, %v799_v35  ;;  %v2010_v45 = vpop.f32.mrb[35].mxu0 }
 0x136   : > { %v775_v46 = vpop.f32.mrb[36].mxu1 }
 0x137   : > { %v940_v52 = vpop.f32.mrb[36].mxu0  ;;  %v802_v56 = vadd.f32 %v775_v46, %v637_v49  ;;  %v1993_v48 = vpop.f32.mrb[37].mxu1 }
 0x138   : > { %v973_v40 = vadd.f32 %v940_v52, %v800_v43  ;;  %v2013_v53 = vpop.f32.mrb[37].mxu0  ;;  %v778_v59 = vpop.f32.mrb[38].mxu1 }
 0x139   : > { %v943_v55 = vpop.f32.mrb[38].mxu0  ;;  %v803_v61 = vadd.f32 %v778_v59, %v638_v8  ;;  %v1994_v62 = vpop.f32.mrb[39].mxu1 }
 0x13a   : > { %v974_v57 = vadd.f32 %v943_v55, %v801_v50  ;;  %v2014_v58 = vpop.f32.mrb[39].mxu0 }
 0x13e   : > { %v783_v3 = vpop.f32.mrb[40].mxu1 }
 0x13f   : > { %v948_v63 = vpop.f32.mrb[40].mxu0  ;;  %v804_v4 = vadd.f32 %v783_v3, %v639_v15  ;;  %v1997_v60 = vpop.f32.mrb[41].mxu1 }
 0x140   : > { %v975_v54 = vadd.f32 %v948_v63, %v802_v56  ;;  %v2017_v0 = vpop.f32.mrb[41].mxu0  ;;  %v786_v7 = vpop.f32.mrb[42].mxu1 }
 0x141   : > { %v951_v2 = vpop.f32.mrb[42].mxu0  ;;  %v805_v9 = vadd.f32 %v786_v7, %v640_v22  ;;  %v1998_v10 = vpop.f32.mrb[43].mxu1 }
 0x142   : > { %v976_v5 = vadd.f32 %v951_v2, %v803_v61  ;;  %v2018_v6 = vpop.f32.mrb[43].mxu0 }
 0x146   : > { %v791_v14 = vpop.f32.mrb[44].mxu1 }
 0x147   : > { %v956_v12 = vpop.f32.mrb[44].mxu0  ;;  %v806_v17 = vadd.f32 %v791_v14, %v641_v11  ;;  %v2001_v8 = vpop.f32.mrb[45].mxu1 }
 0x148   : > { %v977_v49 = vadd.f32 %v956_v12, %v804_v4  ;;  %v2021_v13 = vpop.f32.mrb[45].mxu0  ;;  %v794_v20 = vpop.f32.mrb[46].mxu1 }
 0x149   : > { %v959_v16 = vpop.f32.mrb[46].mxu0  ;;  %v807_v23 = vadd.f32 %v794_v20, %v642_v32  ;;  %v2002_v42 = vpop.f32.mrb[47].mxu1 }
 0x14a   : > { %v978_v18 = vadd.f32 %v959_v16, %v805_v9  ;;  %v2022_v19 = vpop.f32.mrb[47].mxu0 }
 0x14e   : > { %v1063_v26 = vpop.f32.mrb[48].mxu1 }
 0x14f   : > { %v964_v24 = vpop.f32.mrb[48].mxu0  ;;  %v1102_v29 = vadd.f32 %v1063_v26, %v971_v25  ;;  %v2033_v22 = vpop.f32.mrb[49].mxu1 }
 0x150   : > { %v979_v15 = vadd.f32 %v964_v24, %v806_v17  ;;  %v2025_v1 = vpop.f32.mrb[49].mxu0  ;;  %v1066_v21 = vpop.f32.mrb[50].mxu1 }
 0x151   : > { %v967_v28 = vpop.f32.mrb[50].mxu0  ;;  %v1103_v33 = vadd.f32 %v1066_v21, %v972_v44  ;;  %v2034_v34 = vpop.f32.mrb[51].mxu1 }
 0x152   : > { %v980_v30 = vadd.f32 %v967_v28, %v807_v23  ;;  %v2026_v31 = vpop.f32.mrb[51].mxu0 }
 0x156   : > { %v1071_v37 = vpop.f32.mrb[52].mxu1 }
 0x157   : > { %v1228_v35 = vpop.f32.mrb[52].mxu0  ;;  %v1104_v39 = vadd.f32 %v1071_v37, %v973_v40  ;;  %v2037_v32 = vpop.f32.mrb[53].mxu1 }
 0x158   : > { %v1267_v11 = vadd.f32 %v1228_v35, %v1102_v29  ;;  %v2057_v36 = vpop.f32.mrb[53].mxu0  ;;  %v1074_v27 = vpop.f32.mrb[54].mxu1 }
 0x159   : > { %v1231_v38 = vpop.f32.mrb[54].mxu0  ;;  %v1105_v45 = vadd.f32 %v1074_v27, %v974_v57  ;;  %v2038_v47 = vpop.f32.mrb[55].mxu1 }
 0x15a   : > { %v1268_v41 = vadd.f32 %v1231_v38, %v1103_v33  ;;  %v2058_v43 = vpop.f32.mrb[55].mxu0 }
 0x15e   : > { %v1079_v52 = vpop.f32.mrb[56].mxu1 }
 0x15f   : > { %v1236_v50 = vpop.f32.mrb[56].mxu0  ;;  %v1106_v46 = vadd.f32 %v1079_v52, %v975_v54  ;;  %v2041_v44 = vpop.f32.mrb[57].mxu1 }
 0x160   : > { %v1269_v25 = vadd.f32 %v1236_v50, %v1104_v39  ;;  %v2061_v51 = vpop.f32.mrb[57].mxu0  ;;  %v1082_v48 = vpop.f32.mrb[58].mxu1 }
 0x161   : > { %v1239_v53 = vpop.f32.mrb[58].mxu0  ;;  %v1107_v58 = vadd.f32 %v1082_v48, %v976_v5  ;;  %v2042_v59 = vpop.f32.mrb[59].mxu1 }
 0x162   : > { %v1270_v55 = vadd.f32 %v1239_v53, %v1105_v45  ;;  %v2062_v56 = vpop.f32.mrb[59].mxu0 }
 0x166   : > { %v1087_v63 = vpop.f32.mrb[60].mxu1 }
 0x167   : > { %v1244_v61 = vpop.f32.mrb[60].mxu0  ;;  %v1108_v3 = vadd.f32 %v1087_v63, %v977_v49  ;;  %v2045_v57 = vpop.f32.mrb[61].mxu1 }
 0x168   : > { %v1271_v40 = vadd.f32 %v1244_v61, %v1106_v46  ;;  %v2065_v62 = vpop.f32.mrb[61].mxu0  ;;  %v1090_v60 = vpop.f32.mrb[62].mxu1 }
 0x169   : > { %v1247_v0 = vpop.f32.mrb[62].mxu0  ;;  %v1109_v6 = vadd.f32 %v1090_v60, %v978_v18  ;;  %v2046_v7 = vpop.f32.mrb[63].mxu1 }
 0x16a   : > { %v1272_v2 = vadd.f32 %v1247_v0, %v1107_v58  ;;  %v2066_v4 = vpop.f32.mrb[63].mxu0 }
 0x16e   : > { %v1095_v12 = vpop.f32.mrb[64].mxu1 }
 0x16f   : > { %v1252_v9 = vpop.f32.mrb[64].mxu0  ;;  %v1110_v5 = vadd.f32 %v1095_v12, %v979_v15  ;;  %v2049_v14 = vpop.f32.mrb[65].mxu1 }
 0x170   : > { %v2648_v54 = vadd.f32 %v1252_v9, %v1108_v3  ;;  %v2069_v10 = vpop.f32.mrb[65].mxu0  ;;  %v1098_v8 = vpop.f32.mrb[66].mxu1 }
 0x171   : > { %v1255_v13 = vpop.f32.mrb[66].mxu0  ;;  %v1111_v49 = vadd.f32 %v1098_v8, %v980_v30  ;;  %v2050_v19 = vpop.f32.mrb[67].mxu1  ;;  %v2660_v30 = vld [vmem:[%s2712_s2] ss:$0 sm:$0xff] }
 0x172   : > { %v2650_v16 = vadd.f32 %v1255_v13, %v1109_v6  ;;  %v2070_v17 = vpop.f32.mrb[67].mxu0 }
 0x176   : > { %v1401_v42 = vpop.f32.mrb[68].mxu1 }
 0x177   : > { %v1260_v20 = vpop.f32.mrb[68].mxu0  ;;  %v1440_v1 = vadd.f32 %v1401_v42, %v1267_v11  ;;  %v2081_v26 = vpop.f32.mrb[69].mxu1 }
 0x178   : > { %v2652_v23 = vadd.f32 %v1260_v20, %v1110_v5  ;;  %v2073_v18 = vpop.f32.mrb[69].mxu0  ;;  %v1404_v15 = vpop.f32.mrb[70].mxu1 }
 0x179   : > { %v1263_v24 = vpop.f32.mrb[70].mxu0  ;;  %v1441_v22 = vadd.f32 %v1404_v15, %v1268_v41  ;;  %v2082_v31 = vpop.f32.mrb[71].mxu1 }
 0x17a   : > { %v2654_v28 = vadd.f32 %v1263_v24, %v1111_v49  ;;  %v2074_v29 = vpop.f32.mrb[71].mxu0 }
 0x17e   : > { %v1409_v35 = vpop.f32.mrb[72].mxu1 }
 0x17f   : > { %v1532_v21 = vpop.f32.mrb[72].mxu0  ;;  %v1442_v36 = vadd.f32 %v1409_v35, %v1269_v25  ;;  %v2085_v38 = vpop.f32.mrb[73].mxu1 }
 0x180   : > { %v1571_v33 = vadd.f32 %v1532_v21, %v1440_v1  ;;  %v2105_v34 = vpop.f32.mrb[73].mxu0  ;;  %v1412_v41 = vpop.f32.mrb[74].mxu1 }
 0x181   : > { %v1535_v11 = vpop.f32.mrb[74].mxu0  ;;  %v1443_v43 = vadd.f32 %v1412_v41, %v1270_v55  ;;  %v2086_v45 = vpop.f32.mrb[75].mxu1 }
 0x182   : > { %v1588_v37 = vadd.f32 %v2660_v30, %v1571_v33  ;;  %v1572_v39 = vadd.f32 %v1535_v11, %v1441_v22  ;;  %v2106_v32 = vpop.f32.mrb[75].mxu0 }
 0x184   : > { %1599 = vst.msk [vmem:[%s2665_s11] sm:$0xff] %vm1598_vm8, %v1588_v37  ;;  %v1589_v27 = vadd.f32 %v2660_v30, %v1572_v39 }
 0x186   : > { %1600 = vst.msk [vmem:[%s2665_s11 + $0x8] sm:$0xff] %vm1598_vm8, %v1589_v27  ;;  %v1417_v25 = vpop.f32.mrb[76].mxu1 }
 0x187   : > { %v1540_v47 = vpop.f32.mrb[76].mxu0  ;;  %v1444_v53 = vadd.f32 %v1417_v25, %v1271_v40  ;;  %v2089_v44 = vpop.f32.mrb[77].mxu1 }
 0x188   : > { %v1573_v50 = vadd.f32 %v1540_v47, %v1442_v36  ;;  %v2109_v51 = vpop.f32.mrb[77].mxu0  ;;  %v1420_v58 = vpop.f32.mrb[78].mxu1 }
 0x189   : > { %v1543_v52 = vpop.f32.mrb[78].mxu0  ;;  %v1445_v55 = vadd.f32 %v1420_v58, %v1272_v2  ;;  %v2090_v61 = vpop.f32.mrb[79].mxu1 }
 0x18a   : > { %v1590_v46 = vadd.f32 %v2660_v30, %v1573_v50  ;;  %v1574_v56 = vadd.f32 %v1543_v52, %v1443_v43  ;;  %v2110_v48 = vpop.f32.mrb[79].mxu0 }
 0x18c   : > { %1601 = vst.msk [vmem:[%s2665_s11 + $0x10] sm:$0xff] %vm1598_vm8, %v1590_v46  ;;  %v1591_v59 = vadd.f32 %v2660_v30, %v1574_v56 }
 0x18e   : > { %1602 = vst.msk [vmem:[%s2665_s11 + $0x18] sm:$0xff] %vm1598_vm8, %v1591_v59  ;;  %v1425_v40 = vpop.f32.mrb[80].mxu1 }
 0x18f   : > { %v1548_v62 = vpop.f32.mrb[80].mxu0  ;;  %v1446_v57 = vadd.f32 %v1425_v40, %v2648_v54  ;;  %v2093_v60 = vpop.f32.mrb[81].mxu1 }
 0x190   : > { %v1575_v63 = vadd.f32 %v1548_v62, %v1444_v53  ;;  %v2113_v0 = vpop.f32.mrb[81].mxu0  ;;  %v1428_v9 = vpop.f32.mrb[82].mxu1 }
 0x191   : > { %v1551_v3 = vpop.f32.mrb[82].mxu0  ;;  %v1447_v2 = vadd.f32 %v1428_v9, %v2650_v16  ;;  %v2094_v12 = vpop.f32.mrb[83].mxu1 }
 0x192   : > { %v1592_v4 = vadd.f32 %v2660_v30, %v1575_v63  ;;  %v1576_v6 = vadd.f32 %v1551_v3, %v1445_v55  ;;  %v2114_v7 = vpop.f32.mrb[83].mxu0 }
 0x194   : > { %1603 = vst.msk [vmem:[%s2665_s11 + $0x20] sm:$0xff] %vm1598_vm8, %v1592_v4  ;;  %v1593_v10 = vadd.f32 %v2660_v30, %v1576_v6 }
 0x196   : > { %1604 = vst.msk [vmem:[%s2665_s11 + $0x28] sm:$0xff] %vm1598_vm8, %v1593_v10  ;;  %v1433_v14 = vpop.f32.mrb[84].mxu1 }
 0x197   : > { %v1556_v13 = vpop.f32.mrb[84].mxu0  ;;  %v1448_v8 = vadd.f32 %v1433_v14, %v2652_v23  ;;  %v2097_v19 = vpop.f32.mrb[85].mxu1 }
 0x198   : > { %v1577_v5 = vadd.f32 %v1556_v13, %v1446_v57  ;;  %v2117_v54 = vpop.f32.mrb[85].mxu0  ;;  %v1436_v16 = vpop.f32.mrb[86].mxu1 }
 0x199   : > { %v1559_v17 = vpop.f32.mrb[86].mxu0  ;;  %v1449_v42 = vadd.f32 %v1436_v16, %v2654_v28  ;;  %v2098_v1 = vpop.f32.mrb[87].mxu1 }
 0x19a   : > { %v1594_v49 = vadd.f32 %v2660_v30, %v1577_v5  ;;  %v1578_v20 = vadd.f32 %v1559_v17, %v1447_v2  ;;  %v2118_v18 = vpop.f32.mrb[87].mxu0 }
 0x19c   : > { %1605 = vst.msk [vmem:[%s2665_s11 + $0x30] sm:$0xff] %vm1598_vm8, %v1594_v49  ;;  %v1595_v24 = vadd.f32 %v2660_v30, %v1578_v20 }
 0x19e   : > { %1606 = vst.msk [vmem:[%s2665_s11 + $0x38] sm:$0xff] %vm1598_vm8, %v1595_v24 }
 0x19f   : > { %v1564_v26 = vpop.f32.mrb[88].mxu0 }
 0x1a0   : > { %v1579_v29 = vadd.f32 %v1564_v26, %v1448_v8  ;;  %v2121_v23 = vpop.f32.mrb[89].mxu0 }
 0x1a1   : > { %v1567_v15 = vpop.f32.mrb[90].mxu0 }
 0x1a2   : > { %v1596_v22 = vadd.f32 %v2660_v30, %v1579_v29  ;;  %v1580_v31 = vadd.f32 %v1567_v15, %v1449_v42  ;;  %v2122_v21 = vpop.f32.mrb[91].mxu0 }
 0x1a4   : > { %1607 = vst.msk [vmem:[%s2665_s11 + $0x40] sm:$0xff] %vm1598_vm8, %v1596_v22  ;;  %v1597_v33 = vadd.f32 %v2660_v30, %v1580_v31 }
 0x1a6   : > { %1608 = vst.msk [vmem:[%s2665_s11 + $0x48] sm:$0xff] %vm1598_vm8, %v1597_v33 }
 0x1a7 PF: > { %s13_s14 = sadd.s32 1, %s2218_s14   ;;  %s2714_s12 = smov %s2214_s13 }
 0x1a8   : > { %p10_p5 = scmp.ge.s32.totalorder %s13_s14, 4   ;;  %s2715_s13 = smov %s2717_s15 }
 0x1aa   :  { %12 = sbr.rel (!%p10_p5) target bundleno = 2 (0x2), region = 76 }

</bundles_post_ra>
